<compile_context>
chip_gen: v5e
topology: v5e:2x2
jax: 0.10.0
libtpu: 0.0.40
codegen_flags: <defaults>
</compile_context>

<pallas_src>
import functools

import jax
import jax.numpy as jnp
from jax import lax
from jax.experimental import pallas as pl
from jax.experimental.pallas import tpu as pltpu

_NEG_BIG = -1e30  # finite "-inf": padded rows/cols never produce nan via inf - inf


def _clip_loss_kernel(scale_ref, a_ref, t_ref,
                      row_lse_ref, col_m_ref, col_l_ref,
                      row_m, row_l, *, n, tm, tn, n_pad):
    i = pl.program_id(0)          # row block (megacore-parallel axis)
    j = pl.program_id(1)          # col block (reduction axis, last)
    nj = pl.num_programs(1)
    needs_mask = (n != n_pad)     # trace-time Python bool

    scale = scale_ref[0, 0]

    # (TM, TN) logits tile: contraction over D, no explicit transpose of the text tile.
    s = lax.dot_general(a_ref[...], t_ref[...],
                        dimension_numbers=(((1,), (1,)), ((), ())),
                        preferred_element_type=jnp.float32)
    s = s * scale

    if needs_mask:
        row_ids = i * tm + lax.broadcasted_iota(jnp.int32, (tm, 1), 0)
        col_ids = j * tn + lax.broadcasted_iota(jnp.int32, (1, tn), 1)
        valid = jnp.logical_and(row_ids < n, col_ids < n)
        s = jnp.where(valid, s, _NEG_BIG)

    # ---- column-direction partials for this tile (merged across row blocks in JAX) ----
    tile_col_max = jnp.max(s, axis=0, keepdims=True)                    # (1, TN)
    col_m_ref[...] = tile_col_max[None]
    col_l_ref[...] = jnp.sum(jnp.exp(s - tile_col_max), axis=0, keepdims=True)[None]

    # ---- online row-LSE across the j (reduction) axis ----
    tile_row_max = jnp.max(s, axis=1, keepdims=True)                    # (TM, 1)

    @pl.when(j == 0)
    def _():
        row_m[...] = tile_row_max
        row_l[...] = jnp.sum(jnp.exp(s - tile_row_max), axis=1, keepdims=True)

    @pl.when(j > 0)
    def _():
        m_old = row_m[...]
        m_new = jnp.maximum(m_old, tile_row_max)
        row_l[...] = (row_l[...] * jnp.exp(m_old - m_new)
                      + jnp.sum(jnp.exp(s - m_new), axis=1, keepdims=True))
        row_m[...] = m_new

    @pl.when(j == nj - 1)
    def _():
        row_lse_ref[...] = row_m[...] + jnp.log(row_l[...])


def _round_up(x, m):
    return ((x + m - 1) // m) * m


def clip_loss(audio_features, text_features, logit_scale_a, *, tile=None):
    """Pallas implementation of ClipLoss.forward (world_size=1, mlp_loss=False)."""
    assert audio_features.shape == text_features.shape
    assert audio_features.dtype == text_features.dtype
    n, d = audio_features.shape

    kind = jax.devices()[0].device_kind.lower()
    is_v7 = "v7" in kind
    is_v5_v6 = ("v5" in kind) or ("v6" in kind)

    if tile is not None:
        tm_target = tn_target = max(128, _round_up(tile, 128))
    elif is_v5_v6:
        tm_target, tn_target = 1024, 512     # 128 MiB VMEM: big resident audio row block
    else:
        tm_target, tn_target = 512, 512      # v7x (64 MiB VMEM per TC) and unknown parts

    n128 = max(128, _round_up(n, 128))
    tn = min(tn_target, n128)
    tm = min(tm_target, n128)
    if tm > tn:
        tm = (tm // tn) * tn                 # keep tm a multiple of tn
    else:
        tm = tn
    n_pad = _round_up(n, max(tm, tn))

    a_in, t_in = audio_features, text_features
    if n_pad != n:
        pad = n_pad - n
        a_in = jnp.pad(a_in, ((0, pad), (0, 0)))
        t_in = jnp.pad(t_in, ((0, pad), (0, 0)))

    scale = jnp.asarray(logit_scale_a, dtype=jnp.float32).reshape(1, 1)
    ni, nj = n_pad // tm, n_pad // tn
    grid = (ni, nj)

    itemsize = jnp.dtype(audio_features.dtype).itemsize
    vmem_est = (2 * (tm + tn) * d * itemsize   # double-buffered input blocks
                + 12 * tm * tn * 4             # logits tile + mask/exp temporaries (generous)
                + 4 * (tm + 4 * tn) * 4        # tiny output blocks + row m/l scratch
                + (4 << 20))
    cap = (48 << 20) if is_v7 else (100 << 20)
    vmem_limit = int(min(max(vmem_est, 16 << 20), cap))

    kernel = functools.partial(_clip_loss_kernel, n=n, tm=tm, tn=tn, n_pad=n_pad)

    row_lse, col_m, col_l = pl.pallas_call(
        kernel,
        out_shape=(
            jax.ShapeDtypeStruct((n_pad, 1), jnp.float32),       # per-row LSE
            jax.ShapeDtypeStruct((ni, 1, n_pad), jnp.float32),   # per-row-block column max
            jax.ShapeDtypeStruct((ni, 1, n_pad), jnp.float32),   # per-row-block column sum-exp
        ),
        grid=grid,
        in_specs=[
            pl.BlockSpec((1, 1), lambda i, j: (0, 0),
                         memory_space=pltpu.MemorySpace.SMEM),   # logit_scale_a
            pl.BlockSpec((tm, d), lambda i, j: (i, 0)),          # audio rows (resident over j)
            pl.BlockSpec((tn, d), lambda i, j: (j, 0)),          # text rows  (streamed)
        ],
        out_specs=(
            pl.BlockSpec((tm, 1), lambda i, j: (i, 0)),
            pl.BlockSpec((1, 1, tn), lambda i, j: (i, 0, j)),
            pl.BlockSpec((1, 1, tn), lambda i, j: (i, 0, j)),
        ),
        scratch_shapes=[
            pltpu.VMEM((tm, 1), jnp.float32),    # row running max
            pltpu.VMEM((tm, 1), jnp.float32),    # row running sum-exp
        ],
        compiler_params=pltpu.CompilerParams(
            dimension_semantics=("parallel", "arbitrary"),
            vmem_limit_bytes=vmem_limit,
        ),
    )(scale, a_in, t_in)

    # ---- O((N/tm) * N) logsumexp-merge of the column partials + final combine (XLA) ----
    scale_f = jnp.asarray(logit_scale_a, dtype=jnp.float32)
    col_m = col_m[:, 0, :]                                   # (ni, n_pad)
    col_l = col_l[:, 0, :]
    m_col = jnp.max(col_m, axis=0)                           # (n_pad,)
    l_col = jnp.sum(col_l * jnp.exp(col_m - m_col[None, :]), axis=0)
    lse_col = m_col + jnp.log(l_col)

    sum_row_lse = jnp.sum(row_lse[:n, 0])
    sum_col_lse = jnp.sum(lse_col[:n])

    # diagonal logits: sum_i scale * <a_i, t_i>  (row-wise dot, on the un-padded inputs)
    a32 = audio_features.astype(jnp.float32)
    t32 = text_features.astype(jnp.float32)
    sum_diag = scale_f * jnp.sum(a32 * t32)

    return (sum_row_lse + sum_col_lse - 2.0 * sum_diag) * (0.5 / n)


def clip_loss_ref(audio_features, text_features, logit_scale_a):
    """Pure-JAX reference matching the PyTorch module (f32, highest matmul precision)."""
    a = audio_features.astype(jnp.float32)
    t = text_features.astype(jnp.float32)
    hp = jax.lax.Precision.HIGHEST
    logits_per_audio = logit_scale_a * jnp.dot(a, t.T, precision=hp)
    logits_per_text = logit_scale_a * jnp.dot(t, a.T, precision=hp)
    n = logits_per_audio.shape[0]
    idx = jnp.arange(n)

    def ce(logits):
        lse = jax.scipy.special.logsumexp(logits, axis=1)
        return jnp.mean(lse - logits[idx, idx])

    return 0.5 * (ce(logits_per_audio) + ce(logits_per_text))


if __name__ == "__main__":
    key = jax.random.PRNGKey(0)
    k1, k2 = jax.random.split(key)

    batch, dim = 192, 128
    audio = jax.random.normal(k1, (batch, dim), dtype=jnp.float32)
    text = jax.random.normal(k2, (batch, dim), dtype=jnp.float32)
    # L2-normalize like CLAP does before the loss (cosine-sim logits)
    audio = audio / jnp.linalg.norm(audio, axis=-1, keepdims=True)
    text = text / jnp.linalg.norm(text, axis=-1, keepdims=True)
    logit_scale_a = jnp.float32(20.0)  # exp(learned temperature), deterministic

    # forced small tile: exercises padding (192 -> 256), the multi-tile online row-LSE
    # path, AND the multi-row-block column-partial merge
    loss_tiled = jax.block_until_ready(clip_loss(audio, text, logit_scale_a, tile=128))
    # generation-aware default tile (single padded tile here)
    loss_auto = jax.block_until_ready(clip_loss(audio, text, logit_scale_a))

    ref = clip_loss_ref(audio, text, logit_scale_a)
    # tolerance allows for MXU f32 pass decomposition differences
    assert jnp.allclose(loss_tiled, ref, rtol=1e-2, atol=1e-2), (loss_tiled, ref)
    assert jnp.allclose(loss_auto, ref, rtol=1e-2, atol=1e-2), (loss_auto, ref)

    print("KERNEL_OK")
</pallas_src>

<mosaic_0001>
module attributes {stable_mosaic.version = 11 : i64} {
  func.func @_clip_loss_kernel(%arg0: i32, %arg1: i32, %arg2: memref<1x1xf32, #tpu.memory_space<smem>>, %arg3: memref<128x128xf32, #tpu.memory_space<vmem>>, %arg4: memref<128x128xf32, #tpu.memory_space<vmem>>, %arg5: memref<128x1xf32, #tpu.memory_space<vmem>>, %arg6: memref<1x1x128xf32, #tpu.memory_space<vmem>>, %arg7: memref<1x1x128xf32, #tpu.memory_space<vmem>>, %arg8: memref<128x1xf32, #tpu.memory_space<vmem>>, %arg9: memref<128x1xf32, #tpu.memory_space<vmem>>) attributes {dimension_semantics = [#tpu.dimension_semantics<parallel>, #tpu.dimension_semantics<arbitrary>], iteration_bounds = array<i64: 2, 2>, scalar_prefetch = 0 : i64, scratch_operands = 2 : i64, tpu.core_type = #tpu.core_type<tc>, window_params = [{transform_indices = @transform_0, window_bounds = array<i64: 1, 1>}, {transform_indices = @transform_1, window_bounds = array<i64: 128, 128>}, {transform_indices = @transform_2, window_bounds = array<i64: 128, 128>}, {transform_indices = @transform_3, window_bounds = array<i64: 128, 1>}, {transform_indices = @transform_4, window_bounds = array<i64: 1, 1, 128>}, {transform_indices = @transform_5, window_bounds = array<i64: 1, 1, 128>}]} {
    %c0 = arith.constant 0 : index
    %c0_0 = arith.constant 0 : index
    %0 = memref.load %arg2[%c0, %c0_0] : memref<1x1xf32, #tpu.memory_space<smem>>
    %c0_1 = arith.constant 0 : index
    %c0_2 = arith.constant 0 : index
    %1 = vector.load %arg3[%c0_1, %c0_2] : memref<128x128xf32, #tpu.memory_space<vmem>>, vector<128x128xf32>
    %c0_3 = arith.constant 0 : index
    %c0_4 = arith.constant 0 : index
    %2 = vector.load %arg4[%c0_3, %c0_4] : memref<128x128xf32, #tpu.memory_space<vmem>>, vector<128x128xf32>
    %cst = arith.constant dense<0.000000e+00> : vector<128x128xf32>
    %3 = tpu.matmul %1, %2, %cst {dimension_numbers = #tpu.dot_dimension_numbers<[1], [1], [0], [0], [0, 0, 1, 0], [], []>} : vector<128x128xf32>, vector<128x128xf32>, vector<128x128xf32> -> vector<128x128xf32>
    %4 = vector.broadcast %0 : f32 to vector<128x128xf32>
    %5 = arith.mulf %3, %4 : vector<128x128xf32>
    %c128_i32 = arith.constant 128 : i32
    %6 = arith.muli %arg0, %c128_i32 : i32
    %7 = tpu.iota {dimensions = array<i32: 0>} : vector<128x1xi32>
    %8 = vector.broadcast %6 : i32 to vector<128x1xi32>
    %9 = arith.addi %8, %7 : vector<128x1xi32>
    %c128_i32_5 = arith.constant 128 : i32
    %10 = arith.muli %arg1, %c128_i32_5 : i32
    %11 = tpu.iota {dimensions = array<i32: 1>} : vector<1x128xi32>
    %12 = vector.broadcast %10 : i32 to vector<1x128xi32>
    %13 = arith.addi %12, %11 : vector<1x128xi32>
    %c192_i32 = arith.constant 192 : i32
    %14 = vector.broadcast %c192_i32 : i32 to vector<128x1xi32>
    %15 = arith.cmpi slt, %9, %14 : vector<128x1xi32>
    %c192_i32_6 = arith.constant 192 : i32
    %16 = vector.broadcast %c192_i32_6 : i32 to vector<1x128xi32>
    %17 = arith.cmpi slt, %13, %16 : vector<1x128xi32>
    %18 = vector.broadcast %15 : vector<128x1xi1> to vector<128x128xi1>
    %19 = vector.broadcast %17 : vector<1x128xi1> to vector<128x128xi1>
    %20 = arith.andi %18, %19 : vector<128x128xi1>
    %cst_7 = arith.constant -1.000000e+30 : f32
    %21 = vector.broadcast %cst_7 : f32 to vector<128x128xf32>
    %22 = arith.select %20, %5, %21 : vector<128x128xi1>, vector<128x128xf32>
    %cst_8 = arith.constant dense<0xFF800000> : vector<128xf32>
    %23 = vector.multi_reduction <maximumf>, %22, %cst_8 [0] : vector<128x128xf32> to vector<128xf32>
    %24 = vector.shape_cast %23 : vector<128xf32> to vector<1x128xf32>
    %25 = vector.shape_cast %24 : vector<1x128xf32> to vector<1x1x128xf32>
    %c0_9 = arith.constant 0 : index
    %c0_10 = arith.constant 0 : index
    %c0_11 = arith.constant 0 : index
    %26 = vector.load %arg6[%c0_9, %c0_10, %c0_11] : memref<1x1x128xf32, #tpu.memory_space<vmem>>, vector<1x1x128xf32>
    tpu.vector_store %arg6[%c0_9, %c0_10, %c0_11], %25 {strides = array<i32>} : memref<1x1x128xf32, #tpu.memory_space<vmem>>, vector<1x1x128xf32>,
    %27 = vector.broadcast %24 : vector<1x128xf32> to vector<128x128xf32>
    %28 = arith.subf %22, %27 : vector<128x128xf32>
    %29 = math.exp %28 : vector<128x128xf32>
    %cst_12 = arith.constant dense<0.000000e+00> : vector<128xf32>
    %30 = vector.multi_reduction <add>, %29, %cst_12 [0] : vector<128x128xf32> to vector<128xf32>
    %31 = vector.shape_cast %30 : vector<128xf32> to vector<1x128xf32>
    %32 = vector.shape_cast %31 : vector<1x128xf32> to vector<1x1x128xf32>
    %c0_13 = arith.constant 0 : index
    %c0_14 = arith.constant 0 : index
    %c0_15 = arith.constant 0 : index
    %33 = vector.load %arg7[%c0_13, %c0_14, %c0_15] : memref<1x1x128xf32, #tpu.memory_space<vmem>>, vector<1x1x128xf32>
    tpu.vector_store %arg7[%c0_13, %c0_14, %c0_15], %32 {strides = array<i32>} : memref<1x1x128xf32, #tpu.memory_space<vmem>>, vector<1x1x128xf32>,
    %cst_16 = arith.constant dense<0xFF800000> : vector<128xf32>
    %34 = vector.multi_reduction <maximumf>, %22, %cst_16 [1] : vector<128x128xf32> to vector<128xf32>
    %35 = vector.shape_cast %34 : vector<128xf32> to vector<128x1xf32>
    %c0_i32 = arith.constant 0 : i32
    %36 = arith.cmpi eq, %arg1, %c0_i32 : i32
    %37 = arith.extui %36 : i1 to i32
    %c0_i32_17 = arith.constant 0 : i32
    %38 = arith.cmpi ne, %37, %c0_i32_17 : i32
    scf.if %38 {
      %c0_21 = arith.constant 0 : index
      %c0_22 = arith.constant 0 : index
      %45 = vector.load %arg8[%c0_21, %c0_22] : memref<128x1xf32, #tpu.memory_space<vmem>>, vector<128x1xf32>
      tpu.vector_store %arg8[%c0_21, %c0_22], %35 {strides = array<i32>} : memref<128x1xf32, #tpu.memory_space<vmem>>, vector<128x1xf32>,
      %46 = vector.broadcast %35 : vector<128x1xf32> to vector<128x128xf32>
      %47 = arith.subf %22, %46 : vector<128x128xf32>
      %48 = math.exp %47 : vector<128x128xf32>
      %cst_23 = arith.constant dense<0.000000e+00> : vector<128xf32>
      %49 = vector.multi_reduction <add>, %48, %cst_23 [1] : vector<128x128xf32> to vector<128xf32>
      %50 = vector.shape_cast %49 : vector<128xf32> to vector<128x1xf32>
      %c0_24 = arith.constant 0 : index
      %c0_25 = arith.constant 0 : index
      %51 = vector.load %arg9[%c0_24, %c0_25] : memref<128x1xf32, #tpu.memory_space<vmem>>, vector<128x1xf32>
      tpu.vector_store %arg9[%c0_24, %c0_25], %50 {strides = array<i32>} : memref<128x1xf32, #tpu.memory_space<vmem>>, vector<128x1xf32>,
    } else {
    }
    %c0_i32_18 = arith.constant 0 : i32
    %39 = arith.cmpi sgt, %arg1, %c0_i32_18 : i32
    %40 = arith.extui %39 : i1 to i32
    %c0_i32_19 = arith.constant 0 : i32
    %41 = arith.cmpi ne, %40, %c0_i32_19 : i32
    scf.if %41 {
      %c0_21 = arith.constant 0 : index
      %c0_22 = arith.constant 0 : index
      %45 = vector.load %arg8[%c0_21, %c0_22] : memref<128x1xf32, #tpu.memory_space<vmem>>, vector<128x1xf32>
      %46 = arith.maximumf %45, %35 : vector<128x1xf32>
      %c0_23 = arith.constant 0 : index
      %c0_24 = arith.constant 0 : index
      %47 = vector.load %arg9[%c0_23, %c0_24] : memref<128x1xf32, #tpu.memory_space<vmem>>, vector<128x1xf32>
      %48 = arith.subf %45, %46 : vector<128x1xf32>
      %49 = math.exp %48 : vector<128x1xf32>
      %50 = arith.mulf %47, %49 : vector<128x1xf32>
      %51 = vector.broadcast %46 : vector<128x1xf32> to vector<128x128xf32>
      %52 = arith.subf %22, %51 : vector<128x128xf32>
      %53 = math.exp %52 : vector<128x128xf32>
      %cst_25 = arith.constant dense<0.000000e+00> : vector<128xf32>
      %54 = vector.multi_reduction <add>, %53, %cst_25 [1] : vector<128x128xf32> to vector<128xf32>
      %55 = vector.shape_cast %54 : vector<128xf32> to vector<128x1xf32>
      %56 = arith.addf %50, %55 : vector<128x1xf32>
      %c0_26 = arith.constant 0 : index
      %c0_27 = arith.constant 0 : index
      %57 = vector.load %arg9[%c0_26, %c0_27] : memref<128x1xf32, #tpu.memory_space<vmem>>, vector<128x1xf32>
      tpu.vector_store %arg9[%c0_26, %c0_27], %56 {strides = array<i32>} : memref<128x1xf32, #tpu.memory_space<vmem>>, vector<128x1xf32>,
      %c0_28 = arith.constant 0 : index
      %c0_29 = arith.constant 0 : index
      %58 = vector.load %arg8[%c0_28, %c0_29] : memref<128x1xf32, #tpu.memory_space<vmem>>, vector<128x1xf32>
      tpu.vector_store %arg8[%c0_28, %c0_29], %46 {strides = array<i32>} : memref<128x1xf32, #tpu.memory_space<vmem>>, vector<128x1xf32>,
    } else {
    }
    %c1_i32 = arith.constant 1 : i32
    %42 = arith.cmpi eq, %arg1, %c1_i32 : i32
    %43 = arith.extui %42 : i1 to i32
    %c0_i32_20 = arith.constant 0 : i32
    %44 = arith.cmpi ne, %43, %c0_i32_20 : i32
    scf.if %44 {
      %c0_21 = arith.constant 0 : index
      %c0_22 = arith.constant 0 : index
      %45 = vector.load %arg8[%c0_21, %c0_22] : memref<128x1xf32, #tpu.memory_space<vmem>>, vector<128x1xf32>
      %c0_23 = arith.constant 0 : index
      %c0_24 = arith.constant 0 : index
      %46 = vector.load %arg9[%c0_23, %c0_24] : memref<128x1xf32, #tpu.memory_space<vmem>>, vector<128x1xf32>
      %47 = math.log %46 : vector<128x1xf32>
      %48 = arith.addf %45, %47 : vector<128x1xf32>
      %c0_25 = arith.constant 0 : index
      %c0_26 = arith.constant 0 : index
      %49 = vector.load %arg5[%c0_25, %c0_26] : memref<128x1xf32, #tpu.memory_space<vmem>>, vector<128x1xf32>
      tpu.vector_store %arg5[%c0_25, %c0_26], %48 {strides = array<i32>} : memref<128x1xf32, #tpu.memory_space<vmem>>, vector<128x1xf32>,
    } else {
    }
    return
  }
  func.func @transform_0(%arg0: i32, %arg1: i32) -> (i32, i32) {
    %c0_i32 = arith.constant 0 : i32
    %c0_i32_0 = arith.constant 0 : i32
    %c0_i32_1 = arith.constant 0 : i32
    return %c0_i32, %c0_i32_0 : i32, i32
  }
  func.func @transform_1(%arg0: i32, %arg1: i32) -> (i32, i32) {
    %c0_i32 = arith.constant 0 : i32
    %c0_i32_0 = arith.constant 0 : i32
    return %arg0, %c0_i32 : i32, i32
  }
  func.func @transform_2(%arg0: i32, %arg1: i32) -> (i32, i32) {
    %c0_i32 = arith.constant 0 : i32
    %c0_i32_0 = arith.constant 0 : i32
    return %arg1, %c0_i32 : i32, i32
  }
  func.func @transform_3(%arg0: i32, %arg1: i32) -> (i32, i32) {
    %c0_i32 = arith.constant 0 : i32
    %c0_i32_0 = arith.constant 0 : i32
    return %arg0, %c0_i32 : i32, i32
  }
  func.func @transform_4(%arg0: i32, %arg1: i32) -> (i32, i32, i32) {
    %c0_i32 = arith.constant 0 : i32
    %c0_i32_0 = arith.constant 0 : i32
    return %arg0, %c0_i32, %arg1 : i32, i32, i32
  }
  func.func @transform_5(%arg0: i32, %arg1: i32) -> (i32, i32, i32) {
    %c0_i32 = arith.constant 0 : i32
    %c0_i32_0 = arith.constant 0 : i32
    return %arg0, %c0_i32, %arg1 : i32, i32, i32
  }
}

</mosaic_0001>

<bundles_post_ra>
// kernel: tpu_custom_call.1
= control target key start
LH: loop header
LB: loop body
LE: loop exit
PB: predicated region body
PF: predicated region fallthrough
CT: control target
= control target key end

     0   :  { %s3028_s0 = inlined_call_operand.<no memory space> [shape: f32[1,1], index: 0, kind: input, shape index: {}]   ;;  %s3029_s1 = inlined_call_operand.hbm [shape: f32[256,128], index: 1, kind: input, shape index: {}]   ;;  %s3030_s2 = inlined_call_operand.hbm [shape: f32[256,128], index: 2, kind: input, shape index: {}]   ;;  %s3031_s3 = inlined_call_operand.vmem [shape: f32[256,1], index: 3, kind: output, shape index: {0}]   ;;  %s3032_s4 = inlined_call_operand.hbm [shape: f32[2,1,256], index: 4, kind: output, shape index: {1}]   ;;  %s3033_s5 = inlined_call_operand.hbm [shape: f32[2,1,256], index: 5, kind: output, shape index: {2}]  }
   0x1   :  { %3046 = sst [smem:[#allocation25_spill]] %s3029_s1 }
   0x2   :  { %3047 = sst [smem:[#allocation26_spill]] %s3030_s2 }
   0x3   :  { %3048 = sst [smem:[#allocation27_spill]] %s3031_s3 }
   0x4   :  { %3049 = sst [smem:[#allocation28_spill]] %s3032_s4 }
   0x5   :  { %3050 = sst [smem:[#allocation29_spill]] %s3033_s5 }
   0x6   :  { %11 = sst [smem:[#allocation4]] %s3028_s0 }
   0x7   :  { %12 = vsyncpa [#allocation6], 0 }
   0x8   :  { %14 = vsyncpa [#allocation6 + $0x1], 0 }
   0x9   :  { %15 = vsyncpa [#allocation9], 0 }
   0xa   :  { %17 = vsyncpa [#allocation9 + $0x1], 0 }
   0xb   :  { %18 = vsyncpa [#allocation7], 0 }
   0xc   :  { %20 = vsyncpa [#allocation7 + $0x1], 0 }
   0xd   :  { %21 = vsyncpa [#allocation12], 0 }
   0xe   :  { %23 = vsyncpa [#allocation12 + $0x1], 0  ;;  %s2089_s20 = smov 0   ;;  %s2091_s21 = smov 0  }
   0xf   :  { %s2093_s22 = smov 0   ;;  %s2095_s23 = smov 0  }
  0x10   :  { %s2097_s24 = smov 0   ;;  %s2099_s25 = smov 0  }
  0x11   :  { %s2101_s0 = smov 0   ;;  %s2103_s26 = smov 0  }
  0x12   :  { %s2105_s27 = smov 0   ;;  %s2107_s28 = smov 0  }
  0x13   :  { %s2109_s29 = smov 0   ;;  %s2111_s30 = smov 0  }
  0x14   :  { %s2113_s6 = smov 0   ;;  %s2115_s7 = smov 0  }
  0x15 LB: > { %3051 = sst [smem:[#allocation17_spill]] %s2035_s28  ;;  %s1433_s8 = sadd.s32 4294967295, %s2051_s7   ;;  %s2051_s7 = sphi %s2115_s7, %s29_s7   ;;  %s2047_s6 = sphi %s2113_s6, %s3110_s6   ;;  %s2043_s30 = sphi %s2111_s30, %s3109_s30   ;;  %s2039_s29 = sphi %s2109_s29, %s3108_s29   ;;  %s2035_s28 = sphi %s2107_s28, %s3107_s28   ;;  %s2031_s27 = sphi %s2105_s27, %s3119_s27   ;;  %s2027_s26 = sphi %s2103_s26, %s3118_s26   ;;  %s2023_s0 = sphi %s2101_s0, %s3117_s0   ;;  %s2019_s25 = sphi %s2099_s25, %s3116_s25   ;;  %s2015_s24 = sphi %s2097_s24, %s3115_s24   ;;  %s2011_s23 = sphi %s2095_s23, %s3114_s23   ;;  %s2007_s22 = sphi %s2093_s22, %s3113_s22   ;;  %s2003_s21 = sphi %s2091_s21, %s3112_s21   ;;  %s1999_s20 = sphi %s2089_s20, %s3111_s20  }
  0x16   : > { %3052 = sst [smem:[#allocation18_spill]] %s2043_s30  ;;  %p76_p0 = scmp.ne.s32.totalorder %s2031_s27, %s2027_s26 }
  0x17   : > { %3053 = sst [smem:[#allocation19_spill]] %s2047_s6  ;;  %p77_p1 = scmp.eq.s32.totalorder %s2051_s7, 0 }
  0x18   : > { %p82_p2 = scmp.ne.s32.totalorder %s2027_s26, %s2023_s0  ;;  %p2164_p3 = scmp.eq.s32.totalorder %s1433_s8, 0 }
  0x19   : > { %p2168_p4 = scmp.eq.s32.totalorder %s1433_s8, 3  ;;  %p78_p5 = por %p77_p1, %p76_p0 }
  0x1a   : > { %p2176_p6 = por %p2164_p3, %p82_p2  ;;  %p1529_p7 = scmp.lt.s32.totalorder %s2051_s7, 4 }
  0x1b   : > { %s217_s14 = sand.u32 1, %s2031_s27   ;;  %s1457_s15 = sshll.u32 %s2047_s6, 7 }
  0x1c   : > { %s1437_s16 = sshll.u32 %s217_s14, 7  ;;  %s3057_s1 = sld [smem:[#allocation25_spill]] }
  0x1d   : > { %s221_s8 = scalar_lea.vmem [#allocation5], %s1437_s16  ;;  %p1516_p8 = pnand %p1529_p7, %p78_p5 }
  0x1e   : > { %s229_s10 = sshll.u32 %s221_s8, 4  ;;  %p1443_p9 = scmp.ge.s32.totalorder %s2051_s7, 1  ;;  %s230_s10 = int_to_ptr.vmem [resolvable:$true] %s229_s10 }
  0x1f   : > { %p259_p10 = scmp.lt.s32.totalorder %s2051_s7, 5  ;;  %s3034_s17 = smov 128  }
  0x20   : > { %s3035_s18 = smov 8   ;;  %s38_s8 = sadd.s32 1, %s2043_s30 }
  0x21   : > { %p2193_p11 = pnand %p1443_p9, %p259_p10  ;;  %s95_s9 = sadd.s32 1, %s2019_s25 }
  0x22   : > { %s226_s19 = scalar_lea.hbm %s3057_s1, %s1457_s15  ;;  %s218_s15 = scalar_lea.sflag [#allocation6], %s217_s14 }
  0x23   : > { %s227_s0 = sshll.u32 %s226_s19, 4  ;;  %s1434_s19 = sadd.s32 4294967294, %s2051_s7   ;;  %s228_s0 = int_to_ptr.hbm [resolvable:$true] %s227_s0 }
  0x24   : > { %1518 = dma.hbm_to_vmem [thread:$0]  (!%p1516_p8), %s228_s0, 2048, %s230_s10, %s218_s15, %s3034_s17, %s3034_s17, %s3035_s18  }
  0x25   : > { %p39_p12 = scmp.ge.s32.totalorder %s38_s8, 2  ;;  %p102_p13 = scmp.ne.s32.totalorder %s2019_s25, %s2015_s24 }
  0x26   : > { %p108_p0 = scmp.ne.s32.totalorder %s2015_s24, %s2011_s23  ;;  %s149_s14 = sadd.s32 1, %s2007_s22 }
  0x27   : > { %s3121_s8 = smov (%p39_p12, %s38_s8), 0  ;;  %s3060_s10 = sadd.s32 1, %s2047_s6 }
  0x28   : > { %3059 = sst [smem:[#allocation20_spill]] %s3121_s8  ;;  %s3123_s10 = smov (!%p39_p12, %s3060_s10), %s2047_s6 }
  0x29   : > { %s92_s0 = ssub.s32 %s2043_s30, %s3121_s8  ;;  %p2214_p2 = por %p102_p13, %p77_p1 }
  0x2a   : > { %p43_p5 = scmp.ge.s32.totalorder %s3123_s10, 2  ;;  %p93_p8 = scmp.eq.s32.totalorder %s92_s0, 0 }
  0x2b   : > { %p2220_p9 = por %p108_p0, %p2164_p3  ;;  %p159_p10 = scmp.ne.s32.totalorder %s2007_s22, %s2003_s21 }
  0x2c   : > { %s3125_s10 = smov (%p43_p5, %s3123_s10), 0  ;;  %p165_p13 = scmp.ne.s32.totalorder %s2003_s21, %s1999_s20 }
  0x2d   : > { %3063 = sst [smem:[#allocation21_spill]] %s3125_s10  ;;  %s66_s18 = ssub.s32 %s2047_s6, %s3125_s10 }
  0x2e   : > { %s2229_s17 = scalar_select %p93_p8, %s2019_s25, %s95_s9  }
  0x2f   : > { %p2235_p1 = por %p2168_p4, %p159_p10  ;;  %p67_p12 = scmp.eq.s32.totalorder %s66_s18, 0 }
  0x30   : > { %3064 = sst [smem:[#allocation22_spill]] %s2229_s17  ;;  %s146_s11 = sor.u32 %s92_s0, %s66_s18 }
  0x31   : > { %s3065_s1 = scalar_select %p2235_p1, 1, 0 }
  0x32   : > { %p147_p3 = scmp.eq.s32.totalorder %s146_s11, 0  ;;  %s3067_s8 = sadd.s32 1, %s2031_s27 }
  0x33   : > { %3066 = sst [smem:[#allocation23_spill]] %s3065_s1  ;;  %p166_p0 = scmp.eq.s32.totalorder %s1434_s19, 3 }
  0x34   : > { %s2244_s5 = scalar_select %p67_p12, %s2031_s27, %s3067_s8  }
  0x35   : > { %s2247_s4 = scalar_select %p147_p3, %s2007_s22, %s149_s14  }
  0x36   : > { %3068 = sst [smem:[#allocation24_spill]] %s2244_s5  ;;  %s239_s9 = sand.u32 1, %s2019_s25  }
  0x37   : > { %s1440_s17 = sshll.u32 %s239_s9, 7  ;;  %p2250_p5 = por %p166_p0, %p165_p13 }
  0x38   : > { %s1458_s10 = sshll.u32 %s2043_s30, 7  ;;  %s243_s6 = scalar_lea.vmem [#allocation8], %s1440_s17 }
  0x39   : > { %s251_s1 = sshll.u32 %s243_s6, 4  ;;  %s3070_s2 = sld [smem:[#allocation26_spill]]  ;;  %s252_s1 = int_to_ptr.vmem [resolvable:$true] %s251_s1 }
  0x3a   : > { %p1519_p4 = pnand %p1529_p7, %p2214_p2  ;;  %s240_s19 = scalar_lea.sflag [#allocation9], %s239_s9 }
  0x3b   : > { %s3071_s8 = smov 8   ;;  %s3072_s14 = smov 128  }
  0x3c   : > { %s265_s6 = sand.u32 (!%p2193_p11), 1, %s2027_s26  }
  0x3d   : > { %263 = sbr.rel (%p2193_p11) target bundleno = 982 (0x3d6), region = 32  ;;  %s1444_s17 = sshll.u32 (!%p2193_p11), %s265_s6, 7 }
  0x3e   : > { %s266_s3 = scalar_lea.sflag (!%p2193_p11), [#allocation6], %s265_s6  ;;  %s2268_s28 = scalar_lea.vmem (!%p2193_p11), [#allocation5], %s1444_s17 }
  0x3f   : > { %s248_s18 = scalar_lea.hbm %s3070_s2, %s1458_s10 }
  0x40   : > { %s249_s0 = sshll.u32 %s248_s18, 4  ;;  %s250_s0 = int_to_ptr.hbm [resolvable:$true] %s249_s0 }
  0x41   : > { %1521 = dma.hbm_to_vmem [thread:$0]  (!%p1519_p4), %s250_s0, 2048, %s252_s1, %s240_s19, %s3072_s14, %s3072_s14, %s3071_s8  }
  0x42   : > { %1982 = dma.done.wait (%p2176_p6), %s266_s3, 2048  }
  0x43   : > { %1984 = vsyncadd (%p2176_p6), %s266_s3, 4294965248  ;;  %s275_s10 = sand.u32 1, %s2015_s24  }
  0x44   : > { %s1445_s15 = sshll.u32 %s275_s10, 7  ;;  %s276_s1 = scalar_lea.sflag [#allocation9], %s275_s10 }
  0x45   : > { %s2275_s11 = scalar_lea.vmem [#allocation8], %s1445_s15 }
  0x46   : > { %1986 = dma.done.wait (%p2220_p9), %s276_s1, 2048  }
  0x47   : > { %1988 = vsyncadd (%p2220_p9), %s276_s1, 4294965248  ;;  %s1446_s16 = sshll.u32 %s2039_s29, 4  ;;  %s3073_s0 = sld [smem:[#allocation27_spill]]  ;;  %v360_v0 = vld [vmem:[%s2275_s11 + $0x78] sm:$0xff]  ;;  %v359_v1 = vld [vmem:[%s2275_s11 + $0x70] sm:$0xff]  ;;  %v444_v32 = vlaneseq }
  0x48   : > { %p323_p7 = scmp.lt.s32.totalorder %s1446_s16, 31  ;;  %361 = vmatpush.xpose.msra.mxu0 %v360_v0  ;;  %1459 = vmatpush.xpose.msra.mxu1 %v360_v0  ;;  %v358_v2 = vld [vmem:[%s2275_s11 + $0x68] sm:$0xff]  ;;  %v357_v3 = vld [vmem:[%s2275_s11 + $0x60] sm:$0xff]  ;;  %v356_v4 = vld [vmem:[%s2275_s11 + $0x58] sm:$0xff]  ;;  %s3074_s23 = sld [smem:[#allocation17_spill]] }
  0x49   : > { %1460 = vmatpush.xpose.msra.mxu2 %v360_v0  ;;  %1461 = vmatpush.xpose.msra.mxu3 %v360_v0  ;;  %v355_v5 = vld [vmem:[%s2275_s11 + $0x50] sm:$0xff]  ;;  %v354_v6 = vld [vmem:[%s2275_s11 + $0x48] sm:$0xff]  ;;  %v353_v7 = vld [vmem:[%s2275_s11 + $0x40] sm:$0xff]  ;;  %v2319_v33 = vshrl.u32 %v444_v32, 7  ;;  %s1448_s8 = sshll.u32 %s2039_s29, 7  ;;  %v480_v35 = vand.u32 127, %v444_v32 }
  0x4a   : > { %s3127_s16 = smov (!%p323_p7, %s1446_s16), 31  ;;  %v352_v8 = vld [vmem:[%s2275_s11 + $0x38] sm:$0xff]  ;;  %v351_v9 = vld [vmem:[%s2275_s11 + $0x30] sm:$0xff]  ;;  %v350_v10 = vld [vmem:[%s2275_s11 + $0x28] sm:$0xff]  ;;  %v2324_v36 = vstv %s1448_s8  ;;  %s328_s6 = sld [smem:[#allocation4]] }
  0x4b   : > { %s1447_s13 = sshll.u32 %s3127_s16, 3  ;;  %v349_v11 = vld [vmem:[%s2275_s11 + $0x20] sm:$0xff]  ;;  %v348_v12 = vld [vmem:[%s2275_s11 + $0x18] sm:$0xff]  ;;  %v347_v13 = vld [vmem:[%s2275_s11 + $0x10] sm:$0xff]  ;;  %v449_v34 = vadd.s32 32, %v2319_v33  ;;  %v462_v40 = vadd.s32 %v2324_v36, %v2319_v33  ;;  %v457_v41 = vadd.s32 96, %v2319_v33 }
  0x4c   : > { %362 = vmatpush.xpose.msra.mxu0 %v359_v1  ;;  %1462 = vmatpush.xpose.msra.mxu1 %v359_v1  ;;  %v346_v14 = vld [vmem:[%s2275_s11 + $0x8] sm:$0xff]  ;;  %v345_v15 = vld [vmem:[%s2275_s11] sm:$0xff]  ;;  %v331_v24 = vld [vmem:[%s2268_s28 + $0x10] sm:$0xff]  ;;  %v453_v42 = vadd.s32 64, %v2319_v33  ;;  %v446_v52 = vadd.s32 8, %v2319_v33  ;;  %v447_v53 = vadd.s32 16, %v2319_v33 }
  0x4d   : > { %s2285_s19 = scalar_lea.vmem %s3073_s0, %s1447_s13  ;;  %1463 = vmatpush.xpose.msra.mxu2 %v359_v1  ;;  %1464 = vmatpush.xpose.msra.mxu3 %v359_v1  ;;  %v329_v16 = vld [vmem:[%s2268_s28] sm:$0xff]  ;;  %v330_v20 = vld [vmem:[%s2268_s28 + $0x8] sm:$0xff]  ;;  %v335_v25 = vld [vmem:[%s2268_s28 + $0x30] sm:$0xff]  ;;  %v466_v38 = vadd.s32 %v2324_v36, %v449_v34  ;;  %vm483_vm2 = vcmp.lt.s32.totalorder %v462_v40, 192  ;;  %v474_v46 = vadd.s32 %v2324_v36, %v457_v41  ;;  %v450_v54 = vadd.s32 40, %v2319_v33  ;;  %s2495_s17 = sand.u32 1, %s2003_s21  }
  0x4e   : > { %v333_v17 = vld [vmem:[%s2268_s28 + $0x20] sm:$0xff]  ;;  %v334_v21 = vld [vmem:[%s2268_s28 + $0x28] sm:$0xff]  ;;  %v339_v26 = vld [vmem:[%s2268_s28 + $0x50] sm:$0xff]  ;;  %s1449_s14 = sshll.u32 %s3074_s23, 7  ;;  %v470_v49 = vadd.s32 %v2324_v36, %v453_v42  ;;  %v463_v61 = vadd.s32 %v2324_v36, %v446_v52  ;;  %v464_v62 = vadd.s32 %v2324_v36, %v447_v53  ;;  %v454_v1 = vadd.s32 72, %v2319_v33  ;;  %s313_s3 = scalar_lea.vmem [#allocation10], %s2495_s17 }
  0x4f   : > { %v337_v18 = vld [vmem:[%s2268_s28 + $0x40] sm:$0xff]  ;;  %v338_v22 = vld [vmem:[%s2268_s28 + $0x48] sm:$0xff]  ;;  %v343_v27 = vld [vmem:[%s2268_s28 + $0x70] sm:$0xff]  ;;  %v481_v37 = vstv %s1449_s14  ;;  %vm487_vm0 = vcmp.lt.s32.totalorder %v466_v38, 192  ;;  %vm495_vm5 = vcmp.lt.s32.totalorder %v474_v46, 192  ;;  %v467_v0 = vadd.s32 %v2324_v36, %v450_v54  ;;  %p1450_p6 = scmp.ne.s32.totalorder %s3074_s23, 0 }
  0x50   : > { %363 = vmatpush.xpose.msra.mxu0 %v358_v2  ;;  %1465 = vmatpush.xpose.msra.mxu1 %v358_v2  ;;  %v341_v19 = vld [vmem:[%s2268_s28 + $0x60] sm:$0xff]  ;;  %v342_v23 = vld [vmem:[%s2268_s28 + $0x68] sm:$0xff]  ;;  %v332_v28 = vld [vmem:[%s2268_s28 + $0x18] sm:$0xff]  ;;  %v2327_v39 = vadd.s32 %v481_v37, %v480_v35  ;;  %v2334_v43 = vstv %s328_s6  ;;  %vm491_vm6 = vcmp.lt.s32.totalorder %v470_v49, 192  ;;  %vm484_vm9 = vcmp.lt.s32.totalorder %v463_v61, 192 }
  0x51   : > { %1466 = vmatpush.xpose.msra.mxu2 %v358_v2  ;;  %1467 = vmatpush.xpose.msra.mxu3 %v358_v2  ;;  %v336_v29 = vld [vmem:[%s2268_s28 + $0x38] sm:$0xff]  ;;  %v451_v2 = vadd.s32 48, %v2319_v33  ;;  %vm485_vm10 = vcmp.lt.s32.totalorder %v464_v62, 192  ;;  %vm488_vm11 = vcmp.lt.s32.totalorder %v467_v0, 192 }
  0x52   : > { %v340_v30 = vld [vmem:[%s2268_s28 + $0x58] sm:$0xff]  ;;  %vm499_vm1 = vcmp.lt.s32.totalorder %v2327_v39, 192 }
  0x53   : > { %v344_v31 = vld [vmem:[%s2268_s28 + $0x78] sm:$0xff]  ;;  %vm538_vm3 = vmand %vm487_vm0, %vm499_vm1  ;;  %s3044_s28 = scalar_lea.vmem [#allocation11], %s2495_s17 }
  0x54   : > { %364 = vmatpush.xpose.msra.mxu0 %v357_v3  ;;  %1468 = vmatpush.xpose.msra.mxu1 %v357_v3  ;;  %vm534_vm4 = vmand %vm483_vm2, %vm499_vm1 }
  0x55   : > { %1469 = vmatpush.xpose.msra.mxu2 %v357_v3  ;;  %1470 = vmatpush.xpose.msra.mxu3 %v357_v3  ;;  %vm546_vm7 = vmand %vm495_vm5, %vm499_vm1 }
  0x56   : > { %vm542_vm8 = vmand %vm491_vm6, %vm499_vm1 }
  0x57   : > { %vm535_vm12 = vmand %vm484_vm9, %vm499_vm1 }
  0x58   : > { %365 = vmatpush.xpose.msra.mxu0 %v356_v4  ;;  %1471 = vmatpush.xpose.msra.mxu1 %v356_v4  ;;  %vm536_vm13 = vmand %vm485_vm10, %vm499_vm1 }
  0x59   : > { %1472 = vmatpush.xpose.msra.mxu2 %v356_v4  ;;  %1473 = vmatpush.xpose.msra.mxu3 %v356_v4  ;;  %v455_v4 = vadd.s32 80, %v2319_v33  ;;  %vm539_vm14 = vmand %vm488_vm11, %vm499_vm1 }
  0x5c   : > { %366 = vmatpush.xpose.msra.mxu0 %v355_v5  ;;  %1474 = vmatpush.xpose.msra.mxu1 %v355_v5 }
  0x5d   : > { %1475 = vmatpush.xpose.msra.mxu2 %v355_v5  ;;  %1476 = vmatpush.xpose.msra.mxu3 %v355_v5  ;;  %v448_v5 = vadd.s32 24, %v2319_v33 }
  0x60   : > { %367 = vmatpush.xpose.msra.mxu0 %v354_v6  ;;  %1477 = vmatpush.xpose.msra.mxu1 %v354_v6 }
  0x61   : > { %1478 = vmatpush.xpose.msra.mxu2 %v354_v6  ;;  %1479 = vmatpush.xpose.msra.mxu3 %v354_v6  ;;  %v471_v6 = vadd.s32 %v2324_v36, %v454_v1 }
  0x63   : > { %vm492_vm15 = vcmp.lt.s32.totalorder %v471_v6, 192 }
  0x64   : > { %368 = vmatpush.xpose.msra.mxu0 %v353_v7  ;;  %1480 = vmatpush.xpose.msra.mxu1 %v353_v7 }
  0x65   : > { %1481 = vmatpush.xpose.msra.mxu2 %v353_v7  ;;  %1482 = vmatpush.xpose.msra.mxu3 %v353_v7  ;;  %v468_v7 = vadd.s32 %v2324_v36, %v451_v2 }
  0x67   : > { %vm489_vm0 = vcmp.lt.s32.totalorder %v468_v7, 192 }
  0x68   : > { %369 = vmatpush.xpose.msra.mxu0 %v352_v8  ;;  %1483 = vmatpush.xpose.msra.mxu1 %v352_v8  ;;  %vm2410_vm5 = vmand %vm489_vm0, %vm499_vm1 }
  0x69   : > { %1484 = vmatpush.xpose.msra.mxu2 %v352_v8  ;;  %1485 = vmatpush.xpose.msra.mxu3 %v352_v8  ;;  %v452_v8 = vadd.s32 56, %v2319_v33 }
  0x6c   : > { %370 = vmatpush.xpose.msra.mxu0 %v351_v9  ;;  %1486 = vmatpush.xpose.msra.mxu1 %v351_v9 }
  0x6d   : > { %1487 = vmatpush.xpose.msra.mxu2 %v351_v9  ;;  %1488 = vmatpush.xpose.msra.mxu3 %v351_v9 }
  0x70   : > { %371 = vmatpush.xpose.msra.mxu0 %v350_v10  ;;  %1489 = vmatpush.xpose.msra.mxu1 %v350_v10 }
  0x71   : > { %1490 = vmatpush.xpose.msra.mxu2 %v350_v10  ;;  %1491 = vmatpush.xpose.msra.mxu3 %v350_v10 }
  0x74   : > { %372 = vmatpush.xpose.msra.mxu0 %v349_v11  ;;  %1492 = vmatpush.xpose.msra.mxu1 %v349_v11 }
  0x75   : > { %1493 = vmatpush.xpose.msra.mxu2 %v349_v11  ;;  %1494 = vmatpush.xpose.msra.mxu3 %v349_v11 }
  0x78   : > { %373 = vmatpush.xpose.msra.mxu0 %v348_v12  ;;  %1495 = vmatpush.xpose.msra.mxu1 %v348_v12 }
  0x79   : > { %1496 = vmatpush.xpose.msra.mxu2 %v348_v12  ;;  %1497 = vmatpush.xpose.msra.mxu3 %v348_v12 }
  0x7c   : > { %374 = vmatpush.xpose.msra.mxu0 %v347_v13  ;;  %1498 = vmatpush.xpose.msra.mxu1 %v347_v13 }
  0x7d   : > { %1499 = vmatpush.xpose.msra.mxu2 %v347_v13  ;;  %1500 = vmatpush.xpose.msra.mxu3 %v347_v13 }
  0x80   : > { %375 = vmatpush.xpose.msra.mxu0 %v346_v14  ;;  %1501 = vmatpush.xpose.msra.mxu1 %v346_v14 }
  0x81   : > { %1502 = vmatpush.xpose.msra.mxu2 %v346_v14  ;;  %1503 = vmatpush.xpose.msra.mxu3 %v346_v14 }
  0x84   : > { %376 = vmatpush.xpose.msra.mxu0 %v345_v15  ;;  %1504 = vmatpush.xpose.msra.mxu1 %v345_v15 }
  0x85   : > { %1505 = vmatpush.xpose.msra.mxu2 %v345_v15  ;;  %1506 = vmatpush.xpose.msra.mxu3 %v345_v15  ;;  %v472_v15 = vadd.s32 %v2324_v36, %v455_v4 }
  0x87   : > { %377 = vmatmul.f32.vlgmr.msra.gmra.mxu0 %v329_v16  ;;  %389 = vmatmul.f32.vlgmr.msra.gmra.mxu1 %v333_v17  ;;  %v465_v17 = vadd.s32 %v2324_v36, %v448_v5  ;;  %vm493_vm2 = vcmp.lt.s32.totalorder %v472_v15, 192 }
  0x88   : > { %401 = vmatmul.f32.vlgmr.msra.gmra.mxu2 %v337_v18  ;;  %413 = vmatmul.f32.vlgmr.msra.gmra.mxu3 %v341_v19  ;;  %v458_v18 = vadd.s32 104, %v2319_v33  ;;  %v459_v19 = vadd.s32 112, %v2319_v33 }
  0x8f   : > { %380 = vmatmul.f32.gmra.mxu0 %v330_v20  ;;  %392 = vmatmul.f32.gmra.mxu1 %v334_v21  ;;  %v469_v20 = vadd.s32 %v2324_v36, %v452_v8 }
  0x90   : > { %404 = vmatmul.f32.gmra.mxu2 %v338_v22  ;;  %416 = vmatmul.f32.gmra.mxu3 %v342_v23  ;;  %v456_v23 = vadd.s32 88, %v2319_v33 }
  0x91   : > { %vm490_vm6 = vcmp.lt.s32.totalorder %v469_v20, 192 }
  0x92   : > { %vm541_vm9 = vmand %vm490_vm6, %vm499_vm1 }
  0x97   : > { %383 = vmatmul.f32.gmra.mxu0 %v331_v24  ;;  %395 = vmatmul.f32.gmra.mxu1 %v335_v25  ;;  %v460_v24 = vadd.s32 120, %v2319_v33  ;;  %v473_v33 = vadd.s32 %v2324_v36, %v456_v23 }
  0x98   : > { %407 = vmatmul.f32.gmra.mxu2 %v339_v26  ;;  %419 = vmatmul.f32.gmra.mxu3 %v343_v27  ;;  %v475_v27 = vadd.s32 %v2324_v36, %v458_v18 }
  0x99   : > { %v477_v34 = vadd.s32 %v2324_v36, %v460_v24 }
  0x9a   : > { %vm496_vm10 = vcmp.lt.s32.totalorder %v475_v27, 192 }
  0x9f   : > { %386 = vmatmul.f32.gmra.mxu0 %v332_v28  ;;  %398 = vmatmul.f32.gmra.mxu1 %v336_v29  ;;  %v476_v29 = vadd.s32 %v2324_v36, %v459_v19 }
  0xa0   : > { %410 = vmatmul.f32.gmra.mxu2 %v340_v30  ;;  %422 = vmatmul.f32.gmra.mxu3 %v344_v31 }
  0xa1   : > { %vm497_vm11 = vcmp.lt.s32.totalorder %v476_v29, 192 }
 0x104   : > { %v378_v44 = vpop.f32.mrf.mxu0  ;;  %v390_v45 = vpop.f32.mrf.mxu1 }
 0x105   : > { %v427_v47 = vmul.f32 %v2334_v43, %v378_v44  ;;  %v431_v48 = vmul.f32 %v2334_v43, %v390_v45 }
 0x107   : > { %v2344_v50 = vsel %vm538_vm3, %v431_v48, -1e+30  ;;  %v2346_v51 = vsel %vm534_vm4, %v427_v47, -1e+30  ;;  %vm2402_vm3 = vmand %vm492_vm15, %vm499_vm1  ;;  %vm486_vm4 = vcmp.lt.s32.totalorder %v465_v17, 192 }
 0x108   : > { %666 = vmax.xlane.f32.xlu2 %v2344_v50  ;;  %658 = vmax.xlane.f32.xlu0 %v2346_v51  ;;  %vm2452_vm15 = vmand %vm497_vm11, %vm499_vm1  ;;  %v566_v54 = vmax.f32 %v2346_v51, %v2344_v50 }
 0x10b   : > { %v402_v55 = vpop.f32.mrf.mxu2  ;;  %v414_v56 = vpop.f32.mrf.mxu3 }
 0x10c   : > { %v435_v57 = vmul.f32 %v2334_v43, %v402_v55  ;;  %v381_v58 = vpop.f32.mrf.mxu0  ;;  %v393_v59 = vpop.f32.mrf.mxu1  ;;  %v439_v60 = vmul.f32 %v2334_v43, %v414_v56 }
 0x10d   : > { %v428_v9 = vmul.f32 %v2334_v43, %v381_v58  ;;  %v432_v12 = vmul.f32 %v2334_v43, %v393_v59 }
 0x10e   : > { %v2361_v63 = vsel %vm546_vm7, %v439_v60, -1e+30  ;;  %v2366_v3 = vsel %vm542_vm8, %v435_v57, -1e+30  ;;  %vm544_vm7 = vmand %vm493_vm2, %vm499_vm1 }
 0x10f   : > { %v2391_v22 = vsel %vm535_vm12, %v428_v9, -1e+30  ;;  %v2397_v25 = vsel %vm539_vm14, %v432_v12, -1e+30  ;;  %vm537_vm8 = vmand %vm486_vm4, %vm499_vm1  ;;  %vm494_vm12 = vcmp.lt.s32.totalorder %v473_v33, 192  ;;  %v570_v0 = vmax.f32 %v566_v54, %v2366_v3 }
 0x110   : > { %674 = vmax.xlane.f32.xlu2 %v2366_v3  ;;  %682 = vmax.xlane.f32.xlu0 %v2361_v63  ;;  %vm547_vm14 = vmand %vm496_vm10, %vm499_vm1  ;;  %v567_v49 = vmax.f32 %v2391_v22, %v2397_v25 }
 0x111   : > { %vm545_vm0 = vmand %vm494_vm12, %vm499_vm1  ;;  %v574_v6 = vmax.f32 %v570_v0, %v2361_v63 }
 0x113   : > { %v405_v10 = vpop.f32.mrf.mxu2  ;;  %v417_v11 = vpop.f32.mrf.mxu3 }
 0x114   : > { %v384_v13 = vpop.f32.mrf.mxu0  ;;  %v396_v14 = vpop.f32.mrf.mxu1  ;;  %v436_v30 = vmul.f32 %v2334_v43, %v405_v10  ;;  %v440_v45 = vmul.f32 %v2334_v43, %v417_v11 }
 0x115   : > { %v429_v16 = vmul.f32 %v2334_v43, %v384_v13  ;;  %v433_v35 = vmul.f32 %v2334_v43, %v396_v14 }
 0x116   : > { %v2433_v44 = vsel %vm2402_vm3, %v436_v30, -1e+30  ;;  %v2471_v62 = vsel %vm547_vm14, %v440_v45, -1e+30 }
 0x117   : > { %v2389_v21 = vsel %vm536_vm13, %v429_v16, -1e+30  ;;  %vm498_vm13 = vcmp.lt.s32.totalorder %v477_v34, 192  ;;  %v2442_v47 = vsel %vm2410_vm5, %v433_v35, -1e+30  ;;  %v571_v55 = vmax.f32 %v567_v49, %v2433_v44 }
 0x118   : > { %662 = vmax.xlane.f32.xlu1 %v2389_v21  ;;  %660 = vmax.xlane.f32.xlu0 %v2391_v22  ;;  %v568_v58 = vmax.f32 %v2389_v21, %v2442_v47  ;;  %vm549_vm2 = vmand %vm498_vm13, %vm499_vm1 }
 0x119   : > { %668 = vmax.xlane.f32.xlu2 %v2397_v25  ;;  %v575_v39 = vmax.f32 %v571_v55, %v2471_v62 }
 0x11b   : > { %v408_v31 = vpop.f32.mrf.mxu2  ;;  %v420_v32 = vpop.f32.mrf.mxu3  ;;  %v578_v9 = vmax.f32 %v574_v6, %v575_v39 }
 0x11c   : > { %v437_v37 = vmul.f32 %v2334_v43, %v408_v31  ;;  %v387_v38 = vpop.f32.mrf.mxu0  ;;  %v399_v40 = vpop.f32.mrf.mxu1  ;;  %v441_v53 = vmul.f32 %v2334_v43, %v420_v32 }
 0x11d   : > { %v430_v41 = vmul.f32 %v2334_v43, %v387_v38  ;;  %v434_v42 = vmul.f32 %v2334_v43, %v399_v40 }
 0x11e   : > { %v2429_v36 = vsel %vm544_vm7, %v437_v37, -1e+30  ;;  %v2479_v4 = vsel %vm2452_vm15, %v441_v53, -1e+30 }
 0x11f   : > { %v2438_v46 = vsel %vm537_vm8, %v430_v41, -1e+30  ;;  %v2444_v48 = vsel %vm541_vm9, %v434_v42, -1e+30  ;;  %v572_v1 = vmax.f32 %v568_v58, %v2429_v36 }
 0x120   : > { %678 = vmax.xlane.f32.xlu1 %v2429_v36  ;;  %676 = vmax.xlane.f32.xlu0 %v2433_v44  ;;  %v569_v59 = vmax.f32 %v2438_v46, %v2444_v48 }
 0x121   : > { %v576_v7 = vmax.f32 %v572_v1, %v2479_v4 }
 0x123   : > { %v411_v56 = vpop.f32.mrf.mxu2  ;;  %v423_v57 = vpop.f32.mrf.mxu3 }
 0x124   : > { %v438_v60 = vmul.f32 %v2334_v43, %v411_v56  ;;  %v442_v61 = vmul.f32 %v2334_v43, %v423_v57 }
 0x126   : > { %v2475_v2 = vsel %vm545_vm0, %v438_v60, -1e+30  ;;  %v2481_v5 = vsel %vm549_vm2, %v442_v61, -1e+30 }
 0x127   : > { %680 = vmax.xlane.f32.xlu2 %v2475_v2  ;;  %v573_v43 = vmax.f32 %v569_v59, %v2475_v2 }
 0x128   : > { %664 = vmax.xlane.f32.xlu1 %v2438_v46  ;;  %670 = vmax.xlane.f32.xlu0 %v2442_v47 }
 0x129   : > { %v577_v8 = vmax.f32 %v573_v43, %v2481_v5 }
 0x12b   : > { %v579_v10 = vmax.f32 %v576_v7, %v577_v8 }
 0x12d   : > { %v580_v11 = vmax.f32 %v578_v9, %v579_v10 }
 0x12f   : > { %686 = vmax.xlane.f32.xlu2 %v2479_v4  ;;  %v581_v12 = vrot.slane %v580_v11, 4 }
 0x130   : > { %672 = vmax.xlane.f32.xlu1 %v2444_v48  ;;  %688 = vmax.xlane.f32.xlu0 %v2481_v5 }
 0x131   : > { %v582_v13 = vmax.f32 %v580_v11, %v581_v12 }
 0x133   : > { %v583_v14 = vrot.slane %v582_v13, 2 }
 0x135   : > { %v584_v15 = vmax.f32 %v582_v13, %v583_v14 }
 0x137   : > { %v585_v16 = vrot.slane %v584_v15, 1 }
 0x138   : > { %684 = vmax.xlane.f32.xlu1 %v2471_v62 }
 0x139   : > { %v2498_v17 = vmax.f32 %v584_v15, %v585_v16 }
 0x13b   : > { %587 = vst [vmem:[%s313_s3] sm:$0x1] %v2498_v17  ;;  %v588_v18 = vsub.f32 %v2346_v51, %v2498_v17  ;;  %v589_v19 = vsub.f32 %v2391_v22, %v2498_v17  ;;  %v590_v20 = vsub.f32 %v2389_v21, %v2498_v17  ;;  %v591_v23 = vsub.f32 %v2438_v46, %v2498_v17 }
 0x13c   : > { %v592_v27 = vsub.f32 %v2344_v50, %v2498_v17  ;;  %v593_v29 = vsub.f32 %v2397_v25, %v2498_v17  ;;  %v594_v31 = vsub.f32 %v2442_v47, %v2498_v17  ;;  %v595_v33 = vsub.f32 %v2444_v48, %v2498_v17 }
 0x13d   : > { %v604_v24 = vmul.f32 1.442695, %v588_v18  ;;  %v606_v26 = vmul.f32 1.442695, %v589_v19  ;;  %v608_v28 = vmul.f32 1.442695, %v590_v20  ;;  %v596_v38 = vsub.f32 %v2366_v3, %v2498_v17 }
 0x13e   : > { %v610_v30 = vmul.f32 1.442695, %v591_v23  ;;  %v612_v32 = vmul.f32 1.442695, %v592_v27  ;;  %v614_v34 = vmul.f32 1.442695, %v593_v29  ;;  %v597_v45 = vsub.f32 %v2433_v44, %v2498_v17 }
 0x13f   : > { %1646 = vpow2.f32 %v604_v24  ;;  %v616_v40 = vmul.f32 1.442695, %v594_v31  ;;  %v618_v49 = vmul.f32 1.442695, %v595_v33  ;;  %v598_v54 = vsub.f32 %v2429_v36, %v2498_v17 }
 0x140   : > { %1648 = vpow2.f32 %v606_v26  ;;  %v620_v55 = vmul.f32 1.442695, %v596_v38  ;;  %v599_v58 = vsub.f32 %v2475_v2, %v2498_v17  ;;  %v622_v59 = vmul.f32 1.442695, %v597_v45 }
 0x141   : > { %1650 = vpow2.f32 %v608_v28  ;;  %v600_v0 = vsub.f32 %v2361_v63, %v2498_v17  ;;  %v624_v1 = vmul.f32 1.442695, %v598_v54  ;;  %v601_v6 = vsub.f32 %v2471_v62, %v2498_v17 }
 0x142   : > { %1652 = vpow2.f32 %v610_v30  ;;  %v626_v7 = vmul.f32 1.442695, %v599_v58  ;;  %v602_v10 = vsub.f32 %v2479_v4, %v2498_v17  ;;  %v603_v14 = vsub.f32 %v2481_v5, %v2498_v17 }
 0x143   : > { %1654 = vpow2.f32 %v612_v32  ;;  %v628_v11 = vmul.f32 1.442695, %v600_v0  ;;  %v630_v15 = vmul.f32 1.442695, %v601_v6 }
 0x144   : > { %1656 = vpow2.f32 %v614_v34  ;;  %v632_v19 = vmul.f32 1.442695, %v602_v10  ;;  %v634_v24 = vmul.f32 1.442695, %v603_v14 }
 0x145   : > { %v1647_v35 = vpop.eup %1646  ;;  %1658 = vpow2.f32 %v616_v40 }
 0x146   : > { %v1649_v37 = vpop.eup %1648  ;;  %1660 = vpow2.f32 %v618_v49 }
 0x147   : > { %v636_v41 = vadd.f32 %v1649_v37, %v1647_v35  ;;  %v1651_v42 = vpop.eup %1650  ;;  %1662 = vpow2.f32 %v620_v55 }
 0x148   : > { %v1653_v53 = vpop.eup %1652  ;;  %1664 = vpow2.f32 %v622_v59 }
 0x149   : > { %v637_v52 = vadd.f32 %v1651_v42, %v636_v41  ;;  %v1655_v57 = vpop.eup %1654  ;;  %1666 = vpow2.f32 %v624_v1 }
 0x14a   : > { %v1657_v61 = vpop.eup %1656  ;;  %1668 = vpow2.f32 %v626_v7 }
 0x14b   : > { %v638_v56 = vadd.f32 %v1653_v53, %v637_v52  ;;  %v1659_v43 = vpop.eup %1658  ;;  %1670 = vpow2.f32 %v628_v11 }
 0x14c   : > { %v1661_v9 = vpop.eup %1660  ;;  %1672 = vpow2.f32 %v630_v15 }
 0x14d   : > { %v639_v60 = vadd.f32 %v1655_v57, %v638_v56  ;;  %v1663_v13 = vpop.eup %1662  ;;  %1674 = vpow2.f32 %v632_v19 }
 0x14e   : > { %v1665_v18 = vpop.eup %1664  ;;  %1676 = vpow2.f32 %v634_v24 }
 0x14f   : > { %v640_v39 = vadd.f32 %v1657_v61, %v639_v60  ;;  %v1667_v23 = vpop.eup %1666 }
 0x150   : > { %v1669_v27 = vpop.eup %1668 }
 0x151   : > { %v641_v8 = vadd.f32 %v1659_v43, %v640_v39  ;;  %v1671_v29 = vpop.eup %1670 }
 0x152   : > { %v1673_v17 = vpop.eup %1672 }
 0x153   : > { %v642_v12 = vadd.f32 %v1661_v9, %v641_v8  ;;  %v1675_v32 = vpop.eup %1674 }
 0x154   : > { %v1677_v34 = vpop.eup %1676 }
 0x155   : > { %v643_v16 = vadd.f32 %v1663_v13, %v642_v12 }
 0x157   : > { %v644_v20 = vadd.f32 %v1665_v18, %v643_v16 }
 0x159   : > { %v645_v26 = vadd.f32 %v1667_v23, %v644_v20 }
 0x15b   : > { %v646_v28 = vadd.f32 %v1669_v27, %v645_v26 }
 0x15d   : > { %v647_v30 = vadd.f32 %v1671_v29, %v646_v28 }
 0x15f   : > { %v648_v31 = vadd.f32 %v1673_v17, %v647_v30 }
 0x161   : > { %v649_v33 = vadd.f32 %v1675_v32, %v648_v31 }
 0x163   : > { %v650_v35 = vadd.f32 %v1677_v34, %v649_v33 }
 0x165   : > { %v651_v37 = vrot.slane %v650_v35, 4 }
 0x167   : > { %v652_v38 = vadd.f32 %v651_v37, %v650_v35 }
 0x169   : > { %v653_v40 = vrot.slane %v652_v38, 2 }
 0x16b   : > { %v654_v41 = vadd.f32 %v653_v40, %v652_v38 }
 0x16d   : > { %v655_v42 = vrot.slane %v654_v41, 1 }
 0x16f   : > { %v656_v45 = vadd.f32 %v655_v42, %v654_v41 }
 0x171   : > { %657 = vst [vmem:[%s3044_s28] sm:$0x1] %v656_v45 }
 0x17b   : > { %v2539_v49 = vpop.xlane.xlu2 %666  ;;  %v2541_v52 = vpop.xlane.xlu0 %658 }
 0x183   : > { %v2543_v53 = vpop.xlane.xlu2 %674  ;;  %v2545_v54 = vpop.xlane.xlu0 %682 }
 0x18b   : > { %v2547_v55 = vpop.xlane.xlu1 %662  ;;  %v2549_v56 = vpop.xlane.xlu0 %660 }
 0x18c   : > { %v2551_v57 = vpop.xlane.xlu2 %668 }
 0x193   : > { %v2553_v58 = vpop.xlane.xlu1 %678  ;;  %v2555_v59 = vpop.xlane.xlu0 %676 }
 0x19a   : > { %v2557_v60 = vpop.xlane.xlu2 %680 }
 0x19b   : > { %v2559_v61 = vpop.xlane.xlu1 %664  ;;  %v2561_v0 = vpop.xlane.xlu0 %670 }
 0x1a2   : > { %v2563_v1 = vpop.xlane.xlu2 %686 }
 0x1a3   : > { %v2565_v39 = vpop.xlane.xlu1 %672  ;;  %v2567_v43 = vpop.xlane.xlu0 %688 }
 0x1a7   : > { %693 = sbr.rel (%p1450_p6) target bundleno = 596 (0x254), region = 44 }
 0x1ab   : > { %v2569_v6 = vpop.xlane.xlu1 %684 }
 0x1ac   : > { %v711_v7 = vsub.f32 %v2346_v51, %v2541_v52  ;;  %v715_v8 = vsub.f32 %v2344_v50, %v2539_v49  ;;  %v713_v9 = vsub.f32 %v2389_v21, %v2547_v55  ;;  %v712_v13 = vsub.f32 %v2391_v22, %v2549_v56 }
 0x1ad   : > { %v716_v14 = vsub.f32 %v2397_v25, %v2551_v57  ;;  %v714_v15 = vsub.f32 %v2438_v46, %v2559_v61  ;;  %v717_v23 = vsub.f32 %v2442_v47, %v2561_v0  ;;  %v719_v26 = vsub.f32 %v2366_v3, %v2543_v53 }
 0x1ae   : > { %v727_v10 = vmul.f32 1.442695, %v711_v7  ;;  %v735_v11 = vmul.f32 1.442695, %v715_v8  ;;  %v731_v12 = vmul.f32 1.442695, %v713_v9  ;;  %v718_v28 = vsub.f32 %v2444_v48, %v2565_v39 }
 0x1af   : > { %v729_v16 = vmul.f32 1.442695, %v712_v13  ;;  %v737_v18 = vmul.f32 1.442695, %v716_v14  ;;  %v733_v19 = vmul.f32 1.442695, %v714_v15  ;;  %v720_v34 = vsub.f32 %v2433_v44, %v2555_v59 }
 0x1b0   : > { %1678 = vpow2.f32 %v727_v10  ;;  %v739_v29 = vmul.f32 1.442695, %v717_v23  ;;  %v743_v30 = vmul.f32 1.442695, %v719_v26  ;;  %v741_v31 = vmul.f32 1.442695, %v718_v28 }
 0x1b1   : > { %1680 = vpow2.f32 %v735_v11  ;;  %v722_v35 = vsub.f32 %v2475_v2, %v2557_v60  ;;  %v721_v37 = vsub.f32 %v2429_v36, %v2553_v58  ;;  %v745_v38 = vmul.f32 1.442695, %v720_v34 }
 0x1b2   : > { %1682 = vpow2.f32 %v731_v12  ;;  %v723_v8 = vsub.f32 %v2361_v63, %v2545_v54  ;;  %v725_v9 = vsub.f32 %v2479_v4, %v2563_v1  ;;  %v724_v10 = vsub.f32 %v2471_v62, %v2569_v6 }
 0x1b3   : > { %1684 = vpow2.f32 %v729_v16  ;;  %v749_v40 = vmul.f32 1.442695, %v722_v35  ;;  %v747_v42 = vmul.f32 1.442695, %v721_v37  ;;  %vm694_vm1 = vcmask 7168  }
 0x1b4   : > { %1686 = vpow2.f32 %v737_v18  ;;  %v751_v11 = vmul.f32 1.442695, %v723_v8  ;;  %v755_v12 = vmul.f32 1.442695, %v725_v9  ;;  %v753_v14 = vmul.f32 1.442695, %v724_v10 }
 0x1b5   : > { %1688 = vpow2.f32 %v733_v19  ;;  %v726_v18 = vsub.f32 %v2481_v5, %v2567_v43  ;;  %695 = vst.msk [vmem:[#allocation2] sm:$0xff] %vm694_vm1, %v2541_v52 }
 0x1b6   : > { %v1679_v20 = vpop.eup %1678  ;;  %1690 = vpow2.f32 %v739_v29  ;;  %696 = vst.msk [vmem:[#allocation2 + $0x8] sm:$0xff] %vm694_vm1, %v2549_v56 }
 0x1b7   : > { %v1681_v24 = vpop.eup %1680  ;;  %759 = vadd.xlane.f32.xlu0 %v1679_v20  ;;  %1692 = vpow2.f32 %v743_v30  ;;  %v757_v19 = vmul.f32 1.442695, %v726_v18  ;;  %697 = vst.msk [vmem:[#allocation2 + $0x10] sm:$0xff] %vm694_vm1, %v2547_v55 }
 0x1b8   : > { %v1683_v27 = vpop.eup %1682  ;;  %767 = vadd.xlane.f32.xlu2 %v1681_v24  ;;  %1694 = vpow2.f32 %v741_v31  ;;  %698 = vst.msk [vmem:[#allocation2 + $0x18] sm:$0xff] %vm694_vm1, %v2559_v61 }
 0x1b9   : > { %763 = vadd.xlane.f32.xlu1 %v1683_v27  ;;  %v1685_v17 = vpop.eup %1684  ;;  %1696 = vpow2.f32 %v745_v38  ;;  %699 = vst.msk [vmem:[#allocation2 + $0x20] sm:$0xff] %vm694_vm1, %v2539_v49 }
 0x1ba   : > { %v1687_v32 = vpop.eup %1686  ;;  %1698 = vpow2.f32 %v749_v40  ;;  %700 = vst.msk [vmem:[#allocation2 + $0x28] sm:$0xff] %vm694_vm1, %v2551_v57 }
 0x1bb   : > { %v1689_v33 = vpop.eup %1688  ;;  %1700 = vpow2.f32 %v747_v42  ;;  %701 = vst.msk [vmem:[#allocation2 + $0x30] sm:$0xff] %vm694_vm1, %v2561_v0 }
 0x1bc   : > { %v1691_v41 = vpop.eup %1690  ;;  %1702 = vpow2.f32 %v751_v11  ;;  %702 = vst.msk [vmem:[#allocation2 + $0x38] sm:$0xff] %vm694_vm1, %v2565_v39 }
 0x1bd   : > { %v1693_v45 = vpop.eup %1692  ;;  %1704 = vpow2.f32 %v755_v12  ;;  %703 = vst.msk [vmem:[#allocation2 + $0x40] sm:$0xff] %vm694_vm1, %v2543_v53 }
 0x1be   : > { %v1695_v7 = vpop.eup %1694  ;;  %1706 = vpow2.f32 %v753_v14  ;;  %704 = vst.msk [vmem:[#allocation2 + $0x48] sm:$0xff] %vm694_vm1, %v2555_v59 }
 0x1bf   : > { %761 = vadd.xlane.f32.xlu0 %v1685_v17  ;;  %v1697_v13 = vpop.eup %1696  ;;  %1708 = vpow2.f32 %v757_v19  ;;  %705 = vst.msk [vmem:[#allocation2 + $0x50] sm:$0xff] %vm694_vm1, %v2553_v58 }
 0x1c0   : > { %769 = vadd.xlane.f32.xlu2 %v1687_v32  ;;  %v1699_v15 = vpop.eup %1698  ;;  %706 = vst.msk [vmem:[#allocation2 + $0x58] sm:$0xff] %vm694_vm1, %v2557_v60 }
 0x1c1   : > { %765 = vadd.xlane.f32.xlu1 %v1689_v33  ;;  %v1701_v16 = vpop.eup %1700  ;;  %707 = vst.msk [vmem:[#allocation2 + $0x60] sm:$0xff] %vm694_vm1, %v2545_v54 }
 0x1c2   : > { %v1703_v20 = vpop.eup %1702  ;;  %708 = vst.msk [vmem:[#allocation2 + $0x68] sm:$0xff] %vm694_vm1, %v2569_v6 }
 0x1c3   : > { %v1705_v23 = vpop.eup %1704  ;;  %709 = vst.msk [vmem:[#allocation2 + $0x70] sm:$0xff] %vm694_vm1, %v2563_v1 }
 0x1c4   : > { %v1707_v24 = vpop.eup %1706  ;;  %710 = vst.msk [vmem:[#allocation2 + $0x78] sm:$0xff] %vm694_vm1, %v2567_v43 }
 0x1c5   : > { %v1709_v26 = vpop.eup %1708 }
 0x1c7   : > { %771 = vadd.xlane.f32.xlu0 %v1691_v41 }
 0x1c8   : > { %775 = vadd.xlane.f32.xlu2 %v1693_v45 }
 0x1c9   : > { %773 = vadd.xlane.f32.xlu1 %v1695_v7 }
 0x1cf   : > { %777 = vadd.xlane.f32.xlu0 %v1697_v13 }
 0x1d0   : > { %781 = vadd.xlane.f32.xlu2 %v1699_v15 }
 0x1d1   : > { %779 = vadd.xlane.f32.xlu1 %v1701_v16 }
 0x1d7   : > { %783 = vadd.xlane.f32.xlu0 %v1703_v20 }
 0x1d8   : > { %787 = vadd.xlane.f32.xlu2 %v1705_v23 }
 0x1d9   : > { %785 = vadd.xlane.f32.xlu1 %v1707_v24 }
 0x1df   : > { %789 = vadd.xlane.f32.xlu0 %v1709_v26 }
 0x22a   : > { %v760_v27 = vpop.xlane.xlu0 %759 }
 0x22b   : > { %791 = vst.msk [vmem:[#allocation3] sm:$0xff] %vm694_vm1, %v760_v27  ;;  %v768_v28 = vpop.xlane.xlu2 %767 }
 0x22c   : > { %795 = vst.msk [vmem:[#allocation3 + $0x20] sm:$0xff] %vm694_vm1, %v768_v28  ;;  %v764_v29 = vpop.xlane.xlu1 %763 }
 0x22d   : > { %793 = vst.msk [vmem:[#allocation3 + $0x10] sm:$0xff] %vm694_vm1, %v764_v29 }
 0x232   : > { %v762_v30 = vpop.xlane.xlu0 %761 }
 0x233   : > { %792 = vst.msk [vmem:[#allocation3 + $0x8] sm:$0xff] %vm694_vm1, %v762_v30  ;;  %v770_v17 = vpop.xlane.xlu2 %769 }
 0x234   : > { %796 = vst.msk [vmem:[#allocation3 + $0x28] sm:$0xff] %vm694_vm1, %v770_v17  ;;  %v766_v31 = vpop.xlane.xlu1 %765 }
 0x235   : > { %794 = vst.msk [vmem:[#allocation3 + $0x18] sm:$0xff] %vm694_vm1, %v766_v31 }
 0x23a   : > { %v772_v32 = vpop.xlane.xlu0 %771 }
 0x23b   : > { %797 = vst.msk [vmem:[#allocation3 + $0x30] sm:$0xff] %vm694_vm1, %v772_v32  ;;  %v776_v33 = vpop.xlane.xlu2 %775 }
 0x23c   : > { %799 = vst.msk [vmem:[#allocation3 + $0x40] sm:$0xff] %vm694_vm1, %v776_v33  ;;  %v774_v34 = vpop.xlane.xlu1 %773 }
 0x23d   : > { %798 = vst.msk [vmem:[#allocation3 + $0x38] sm:$0xff] %vm694_vm1, %v774_v34 }
 0x242   : > { %v778_v35 = vpop.xlane.xlu0 %777 }
 0x243   : > { %800 = vst.msk [vmem:[#allocation3 + $0x48] sm:$0xff] %vm694_vm1, %v778_v35  ;;  %v782_v37 = vpop.xlane.xlu2 %781 }
 0x244   : > { %802 = vst.msk [vmem:[#allocation3 + $0x58] sm:$0xff] %vm694_vm1, %v782_v37  ;;  %v780_v38 = vpop.xlane.xlu1 %779 }
 0x245   : > { %801 = vst.msk [vmem:[#allocation3 + $0x50] sm:$0xff] %vm694_vm1, %v780_v38 }
 0x24a   : > { %v784_v40 = vpop.xlane.xlu0 %783 }
 0x24b   : > { %803 = vst.msk [vmem:[#allocation3 + $0x60] sm:$0xff] %vm694_vm1, %v784_v40  ;;  %v788_v41 = vpop.xlane.xlu2 %787 }
 0x24c   : > { %805 = vst.msk [vmem:[#allocation3 + $0x70] sm:$0xff] %vm694_vm1, %v788_v41  ;;  %v786_v42 = vpop.xlane.xlu1 %785 }
 0x24d   : > { %804 = vst.msk [vmem:[#allocation3 + $0x68] sm:$0xff] %vm694_vm1, %v786_v42 }
 0x252   : > { %v790_v45 = vpop.xlane.xlu0 %789 }
 0x253   : > { %806 = vst.msk [vmem:[#allocation3 + $0x78] sm:$0xff] %vm694_vm1, %v790_v45 }
 0x254 PF: > { %s3081_s10 = sld [smem:[#allocation17_spill]] }
 0x25a   : > { %p1451_p11 = scmp.le.s32.totalorder %s3081_s10, 0 }
 0x25c   : > { %810 = sbr.rel (%p1451_p11) target bundleno = 906 (0x38a), region = 48 }
 0x261   : > { %v2653_v7 = vld [vmem:[#allocation2 + $0x10] sm:$0xff]  ;;  %v2655_v8 = vld [vmem:[#allocation2] sm:$0xff]  ;;  %v2055_v10 = vmov 0   ;;  %v2671_v14 = vld [vmem:[#allocation2 + $0x18] sm:$0xff]  ;;  %vm1099_vm3 = vcmask 7168  }
 0x262   : > { %v2657_v9 = vld [vmem:[#allocation2 + $0x20] sm:$0xff]  ;;  %1711 = vset.pattern.permute.xlu1 %v2055_v10  ;;  %1710 = vset.pattern.permute.xlu0 %v2055_v10  ;;  %v2661_v11 = vmax.f32 %v2653_v7, %v2547_v55  ;;  %v2665_v12 = vmax.f32 %v2655_v8, %v2541_v52  ;;  %v2673_v15 = vld [vmem:[#allocation2 + $0x8] sm:$0xff]  ;;  %v2679_v55 = vmax.f32 %v2671_v14, %v2559_v61  ;;  %v2689_v18 = vld [vmem:[#allocation2 + $0x38] sm:$0xff] }
 0x263   : > { %v2669_v13 = vmax.f32 %v2657_v9, %v2539_v49  ;;  %v2675_v16 = vld [vmem:[#allocation2 + $0x28] sm:$0xff]  ;;  %1712 = vset.pattern.permute.xlu2 %v2055_v10  ;;  %v2683_v52 = vmax.f32 %v2673_v15, %v2549_v56  ;;  %v2703_v20 = vld [vmem:[#allocation2 + $0x40] sm:$0xff]  ;;  %v2714_v27 = vld [vmem:[#allocation2 + $0x50] sm:$0xff]  ;;  %v2720_v29 = vmax.f32 %v2689_v18, %v2565_v39 }
 0x264   : > { %v2687_v49 = vmax.f32 %v2675_v16, %v2551_v57  ;;  %935 = vperm.xlu1 %1711, %v2661_v11   ;;  %v861_v19 = vsub.f32 %v2653_v7, %v2661_v11  ;;  %1118 = vst.msk [vmem:[#allocation2 + $0x10] sm:$0xff] %vm1099_vm3, %v2661_v11  ;;  %925 = vperm.xlu0 %1710, %v2665_v12   ;;  %v2701_v57 = vld [vmem:[#allocation2 + $0x30] sm:$0xff]  ;;  %v2716_v28 = vld [vmem:[#allocation2 + $0x48] sm:$0xff]  ;;  %v2722_v30 = vld [vmem:[#allocation2 + $0x58] sm:$0xff] }
 0x265   : > { %1116 = vst.msk [vmem:[#allocation2] sm:$0xff] %vm1099_vm3, %v2665_v12  ;;  %945 = vperm.xlu2 %1712, %v2669_v13   ;;  %v2724_v17 = vld [vmem:[#allocation2 + $0x68] sm:$0xff]  ;;  %v2730_v31 = vmax.f32 %v2701_v57, %v2561_v0  ;;  %v2734_v32 = vmax.f32 %v2703_v20, %v2543_v53  ;;  %v2736_v33 = vld [vmem:[#allocation2 + $0x60] sm:$0xff]  ;;  %v2744_v34 = vmax.f32 %v2714_v27, %v2553_v58  ;;  %v2764_v38 = vld [vmem:[#allocation2 + $0x70] sm:$0xff] }
 0x266   : > { %1120 = vst.msk [vmem:[#allocation2 + $0x20] sm:$0xff] %vm1099_vm3, %v2669_v13  ;;  %v2748_v0 = vmax.f32 %v2716_v28, %v2555_v59  ;;  %v2758_v37 = vmax.f32 %v2722_v30, %v2557_v60  ;;  %v2762_v58 = vmax.f32 %v2724_v17, %v2569_v6  ;;  %v2774_v41 = vmax.f32 %v2736_v33, %v2545_v54  ;;  %v2776_v60 = vld [vmem:[#allocation2 + $0x78] sm:$0xff] }
 0x267   : > { %1119 = vst.msk [vmem:[#allocation2 + $0x18] sm:$0xff] %vm1099_vm3, %v2679_v55  ;;  %v2792_v45 = vmax.f32 %v2764_v38, %v2563_v1  ;;  %v2799_v10 = vmax.f32 %v2776_v60, %v2567_v43 }
 0x268   : > { %1117 = vst.msk [vmem:[#allocation2 + $0x8] sm:$0xff] %vm1099_vm3, %v2683_v52 }
 0x269   : > { %1121 = vst.msk [vmem:[#allocation2 + $0x28] sm:$0xff] %vm1099_vm3, %v2687_v49 }
 0x26a   : > { %1123 = vst.msk [vmem:[#allocation2 + $0x38] sm:$0xff] %vm1099_vm3, %v2720_v29 }
 0x26b   : > { %1122 = vst.msk [vmem:[#allocation2 + $0x30] sm:$0xff] %vm1099_vm3, %v2730_v31 }
 0x26c   : > { %940 = vperm.xlu1 %1711, %v2679_v55   ;;  %930 = vperm.xlu0 %1710, %v2683_v52   ;;  %1124 = vst.msk [vmem:[#allocation2 + $0x40] sm:$0xff] %vm1099_vm3, %v2734_v32 }
 0x26d   : > { %950 = vperm.xlu2 %1712, %v2687_v49   ;;  %1126 = vst.msk [vmem:[#allocation2 + $0x50] sm:$0xff] %vm1099_vm3, %v2744_v34 }
 0x26e   : > { %1125 = vst.msk [vmem:[#allocation2 + $0x48] sm:$0xff] %vm1099_vm3, %v2748_v0 }
 0x26f   : > { %1127 = vst.msk [vmem:[#allocation2 + $0x58] sm:$0xff] %vm1099_vm3, %v2758_v37 }
 0x270   : > { %1129 = vst.msk [vmem:[#allocation2 + $0x68] sm:$0xff] %vm1099_vm3, %v2762_v58 }
 0x271   : > { %1128 = vst.msk [vmem:[#allocation2 + $0x60] sm:$0xff] %vm1099_vm3, %v2774_v41 }
 0x272   : > { %1130 = vst.msk [vmem:[#allocation2 + $0x70] sm:$0xff] %vm1099_vm3, %v2792_v45 }
 0x273   : > { %1131 = vst.msk [vmem:[#allocation2 + $0x78] sm:$0xff] %vm1099_vm3, %v2799_v10 }
 0x274   : > { %960 = vperm.xlu1 %1711, %v2720_v29   ;;  %955 = vperm.xlu0 %1710, %v2730_v31  }
 0x275   : > { %965 = vperm.xlu2 %1712, %v2734_v32  }
 0x27c   : > { %975 = vperm.xlu1 %1711, %v2744_v34   ;;  %970 = vperm.xlu0 %1710, %v2748_v0  }
 0x27d   : > { %980 = vperm.xlu2 %1712, %v2758_v37  }
 0x284   : > { %990 = vperm.xlu1 %1711, %v2762_v58   ;;  %985 = vperm.xlu0 %1710, %v2774_v41  }
 0x285   : > { %995 = vperm.xlu2 %1712, %v2792_v45  }
 0x28c   : > { %1000 = vperm.xlu0 %1710, %v2799_v10  }
 0x2bf   : > { %v946_v35 = vpop.permute.xlu2 %945 }
 0x2c0   : > { %v1007_v26 = vsub.f32 %v2344_v50, %v946_v35 }
 0x2c2   : > { %v1027_v59 = vmul.f32 1.442695, %v1007_v26 }
 0x2d6   : > { %v936_v43 = vpop.permute.xlu1 %935  ;;  %v926_v6 = vpop.permute.xlu0 %925 }
 0x2d7   : > { %v1005_v1 = vsub.f32 %v2389_v21, %v936_v43  ;;  %v1003_v54 = vsub.f32 %v2346_v51, %v926_v6  ;;  %v951_v51 = vpop.permute.xlu2 %950 }
 0x2d9   : > { %v1023_v42 = vmul.f32 1.442695, %v1005_v1  ;;  %v1019_v40 = vmul.f32 1.442695, %v1003_v54 }
 0x2db   : > { %1713 = vpow2.f32 %v1023_v42 }
 0x2dc   : > { %1715 = vpow2.f32 %v1019_v40 }
 0x2dd   : > { %1717 = vpow2.f32 %v1027_v59 }
 0x2de   : > { %v941_v53 = vpop.permute.xlu1 %940  ;;  %v931_v23 = vpop.permute.xlu0 %930 }
 0x2df   : > { %v1004_v39 = vsub.f32 %v2391_v22, %v931_v23  ;;  %v1006_v21 = vsub.f32 %v2438_v46, %v941_v53  ;;  %v966_v46 = vpop.permute.xlu2 %965 }
 0x2e1   : > { %v1714_v61 = vpop.eup %1713  ;;  %v1021_v24 = vmul.f32 1.442695, %v1004_v39  ;;  %v1025_v6 = vmul.f32 1.442695, %v1006_v21  ;;  %v1008_v39 = vsub.f32 %v2397_v25, %v951_v51  ;;  %v1011_v25 = vsub.f32 %v2366_v3, %v966_v46 }
 0x2e2   : > { %v1716_v56 = vpop.eup %1715  ;;  %1055 = vadd.xlane.f32.xlu0 %v1714_v61 }
 0x2e3   : > { %1051 = vadd.xlane.f32.xlu1 %v1716_v56  ;;  %1719 = vpow2.f32 %v1021_v24  ;;  %v1718_v40 = vpop.eup %1717  ;;  %v1029_v56 = vmul.f32 1.442695, %v1008_v39  ;;  %v1035_v51 = vmul.f32 1.442695, %v1011_v25  ;;  %v3084_v25 = vsub.f32 %v2657_v9, %v2669_v13 }
 0x2e4   : > { %1721 = vpow2.f32 %v1025_v6 }
 0x2e6   : > { %v961_v54 = vpop.permute.xlu1 %960  ;;  %v956_v50 = vpop.permute.xlu0 %955 }
 0x2e7   : > { %v1010_v35 = vsub.f32 %v2444_v48, %v961_v54  ;;  %v1009_v26 = vsub.f32 %v2442_v47, %v956_v50  ;;  %v981_v50 = vpop.permute.xlu2 %980 }
 0x2e8   : > { %v1014_v3 = vsub.f32 %v2475_v2, %v981_v50 }
 0x2e9   : > { %v1033_v42 = vmul.f32 1.442695, %v1010_v35  ;;  %v1031_v22 = vmul.f32 1.442695, %v1009_v26  ;;  %v1720_v23 = vpop.eup %1719 }
 0x2ea   : > { %1053 = vadd.xlane.f32.xlu2 %v1720_v23  ;;  %v1722_v47 = vpop.eup %1721 }
 0x2eb   : > { %1723 = vpow2.f32 %v1033_v42  ;;  %1059 = vadd.xlane.f32.xlu1 %v1718_v40 }
 0x2ec   : > { %1725 = vpow2.f32 %v1031_v22 }
 0x2ed   : > { %1727 = vpow2.f32 %v1029_v56 }
 0x2ee   : > { %v976_v61 = vpop.permute.xlu1 %975  ;;  %v971_v24 = vpop.permute.xlu0 %970 }
 0x2ef   : > { %v1013_v53 = vsub.f32 %v2429_v36, %v976_v61  ;;  %v1012_v48 = vsub.f32 %v2433_v44, %v971_v24 }
 0x2f1   : > { %v1724_v59 = vpop.eup %1723  ;;  %v1039_v1 = vmul.f32 1.442695, %v1013_v53  ;;  %v1037_v43 = vmul.f32 1.442695, %v1012_v48 }
 0x2f2   : > { %v1726_v21 = vpop.eup %1725  ;;  %1057 = vadd.xlane.f32.xlu2 %v1722_v47 }
 0x2f3   : > { %1729 = vpow2.f32 %v1039_v1  ;;  %1065 = vadd.xlane.f32.xlu1 %v1724_v59  ;;  %1063 = vadd.xlane.f32.xlu0 %v1726_v21  ;;  %v1728_v35 = vpop.eup %1727  ;;  %v879_v59 = vmul.f32 1.442695, %v861_v19  ;;  %v3082_v1 = vsub.f32 %v2655_v8, %v2665_v12  ;;  %v3085_v8 = vsub.f32 %v2689_v18, %v2720_v29 }
 0x2f4   : > { %1731 = vpow2.f32 %v1037_v43 }
 0x2f5   : > { %1733 = vpow2.f32 %v1035_v51  ;;  %v875_v43 = vmul.f32 1.442695, %v3082_v1  ;;  %v883_v51 = vmul.f32 1.442695, %v3084_v25  ;;  %v889_v12 = vmul.f32 1.442695, %v3085_v8 }
 0x2f6   : > { %v991_v6 = vpop.permute.xlu1 %990  ;;  %v986_v54 = vpop.permute.xlu0 %985 }
 0x2f7   : > { %v1016_v36 = vsub.f32 %v2471_v62, %v991_v6  ;;  %v1015_v44 = vsub.f32 %v2361_v63, %v986_v54  ;;  %v1041_v62 = vmul.f32 1.442695, %v1014_v3  ;;  %v996_v63 = vpop.permute.xlu2 %995  ;;  %v845_v54 = vld [vmem:[#allocation3 + $0x10] sm:$0xff]  ;;  %v844_v3 = vld [vmem:[#allocation3 + $0x8] sm:$0xff] }
 0x2f8   : > { %v1017_v53 = vsub.f32 %v2479_v4, %v996_v63  ;;  %v3083_v4 = vsub.f32 %v2673_v15, %v2683_v52  ;;  %v3086_v15 = vsub.f32 %v2671_v14, %v2679_v55  ;;  %v3088_v55 = vsub.f32 %v2714_v27, %v2744_v34  ;;  %v849_v27 = vld [vmem:[#allocation3 + $0x30] sm:$0xff] }
 0x2f9   : > { %v1730_v26 = vpop.eup %1729  ;;  %v1045_v40 = vmul.f32 1.442695, %v1016_v36  ;;  %v1043_v42 = vmul.f32 1.442695, %v1015_v44  ;;  %v843_v36 = vld [vmem:[#allocation3] sm:$0xff] }
 0x2fa   : > { %v1732_v22 = vpop.eup %1731  ;;  %1061 = vadd.xlane.f32.xlu2 %v1728_v35  ;;  %v1047_v48 = vmul.f32 1.442695, %v1017_v53  ;;  %v877_v21 = vmul.f32 1.442695, %v3083_v4  ;;  %v881_v52 = vmul.f32 1.442695, %v3086_v15  ;;  %v3087_v35 = vsub.f32 %v2701_v57, %v2730_v31 }
 0x2fb   : > { %1735 = vpow2.f32 %v1045_v40  ;;  %1071 = vadd.xlane.f32.xlu1 %v1730_v26  ;;  %1069 = vadd.xlane.f32.xlu0 %v1732_v22  ;;  %v1734_v46 = vpop.eup %1733  ;;  %v847_v22 = vld [vmem:[#allocation3 + $0x20] sm:$0xff]  ;;  %v895_v29 = vmul.f32 1.442695, %v3088_v55  ;;  %v3089_v57 = vsub.f32 %v2675_v16, %v2687_v49  ;;  %v850_v53 = vld [vmem:[#allocation3 + $0x38] sm:$0xff]  ;;  %v3093_v4 = vsub.f32 %v2736_v33, %v2774_v41 }
 0x2fc   : > { %1737 = vpow2.f32 %v1043_v42  ;;  %v887_v26 = vmul.f32 1.442695, %v3087_v35  ;;  %v3094_v41 = vsub.f32 %v2722_v30, %v2758_v37  ;;  %v3095_v15 = vsub.f32 %v2776_v60, %v2799_v10 }
 0x2fd   : > { %v885_v31 = vmul.f32 1.442695, %v3089_v57  ;;  %v3096_v10 = vsub.f32 %v2764_v38, %v2792_v45 }
 0x2fe   : > { %v1001_v23 = vpop.permute.xlu0 %1000 }
 0x2ff   : > { %v1018_v39 = vsub.f32 %v2481_v5, %v1001_v23 }
 0x301   : > { %v1736_v56 = vpop.eup %1735  ;;  %v1049_v61 = vmul.f32 1.442695, %v1018_v39 }
 0x302   : > { %v1738_v24 = vpop.eup %1737  ;;  %1067 = vadd.xlane.f32.xlu2 %v1734_v46 }
 0x303   : > { %1739 = vpow2.f32 %v1049_v61  ;;  %1077 = vadd.xlane.f32.xlu1 %v1736_v56  ;;  %1075 = vadd.xlane.f32.xlu0 %v1738_v24 }
 0x304   : > { %1741 = vpow2.f32 %v1041_v62  ;;  %v3090_v62 = vsub.f32 %v2716_v28, %v2748_v0  ;;  %v3091_v28 = vsub.f32 %v2724_v17, %v2762_v58  ;;  %v852_v58 = vld [vmem:[#allocation3 + $0x48] sm:$0xff] }
 0x305   : > { %1743 = vpow2.f32 %v1047_v48  ;;  %v846_v48 = vld [vmem:[#allocation3 + $0x18] sm:$0xff] }
 0x306   : > { %1745 = vpow2.f32 %v879_v59  ;;  %v893_v56 = vmul.f32 1.442695, %v3090_v62  ;;  %v901_v0 = vmul.f32 1.442695, %v3091_v28 }
 0x307   : > { %1747 = vpow2.f32 %v875_v43 }
 0x308   : > { %1749 = vpow2.f32 %v877_v21  ;;  %v899_v21 = vmul.f32 1.442695, %v3093_v4 }
 0x309   : > { %v1740_v2 = vpop.eup %1739  ;;  %1751 = vpow2.f32 %v883_v51 }
 0x30a   : > { %v1742_v47 = vpop.eup %1741  ;;  %1753 = vpow2.f32 %v889_v12 }
 0x30b   : > { %1073 = vadd.xlane.f32.xlu2 %v1742_v47  ;;  %1081 = vadd.xlane.f32.xlu0 %v1740_v2  ;;  %v1744_v5 = vpop.eup %1743  ;;  %1755 = vpow2.f32 %v881_v52  ;;  %v3092_v47 = vsub.f32 %v2703_v20, %v2734_v32  ;;  %v905_v52 = vmul.f32 1.442695, %v3095_v15 }
 0x30c   : > { %v1746_v6 = vpop.eup %1745  ;;  %1757 = vpow2.f32 %v887_v26 }
 0x30d   : > { %v1748_v50 = vpop.eup %1747  ;;  %v909_v7 = vmul.f32 %v1746_v6, %v845_v54  ;;  %1759 = vpow2.f32 %v895_v29 }
 0x30e   : > { %v907_v11 = vmul.f32 %v1748_v50, %v843_v36  ;;  %v1750_v13 = vpop.eup %1749  ;;  %1761 = vpow2.f32 %v885_v31  ;;  %v853_v36 = vld [vmem:[#allocation3 + $0x50] sm:$0xff] }
 0x30f   : > { %v1752_v42 = vpop.eup %1751  ;;  %v908_v14 = vmul.f32 %v1750_v13, %v844_v3  ;;  %1763 = vpow2.f32 %v893_v56  ;;  %v855_v3 = vld [vmem:[#allocation3 + $0x60] sm:$0xff]  ;;  %v858_v56 = vld [vmem:[#allocation3 + $0x78] sm:$0xff] }
 0x310   : > { %v911_v18 = vmul.f32 %v1752_v42, %v847_v22  ;;  %v1754_v46 = vpop.eup %1753  ;;  %1765 = vpow2.f32 %v901_v0  ;;  %v851_v42 = vld [vmem:[#allocation3 + $0x40] sm:$0xff] }
 0x311   : > { %v1756_v24 = vpop.eup %1755  ;;  %v914_v16 = vmul.f32 %v1754_v46, %v850_v53  ;;  %v854_v46 = vld [vmem:[#allocation3 + $0x58] sm:$0xff] }
 0x312   : > { %v1758_v2 = vpop.eup %1757  ;;  %v910_v49 = vmul.f32 %v1756_v24, %v846_v48 }
 0x313   : > { %1079 = vadd.xlane.f32.xlu2 %v1744_v5  ;;  %v913_v34 = vmul.f32 %v1758_v2, %v849_v27  ;;  %v891_v5 = vmul.f32 1.442695, %v3092_v47  ;;  %v1760_v43 = vpop.eup %1759  ;;  %v857_v2 = vld [vmem:[#allocation3 + $0x70] sm:$0xff] }
 0x314   : > { %v1762_v54 = vpop.eup %1761  ;;  %v917_v20 = vmul.f32 %v1760_v43, %v853_v36 }
 0x315   : > { %v1764_v17 = vpop.eup %1763  ;;  %1767 = vpow2.f32 %v891_v5 }
 0x316   : > { %1769 = vpow2.f32 %v899_v21  ;;  %v916_v33 = vmul.f32 %v1764_v17, %v852_v58 }
 0x355   : > { %v1056_v19 = vpop.xlane.xlu0 %1055 }
 0x356   : > { %v1052_v44 = vpop.xlane.xlu1 %1051  ;;  %v1085_v9 = vadd.f32 %v1056_v19, %v909_v7  ;;  %v848_v7 = vld [vmem:[#allocation3 + $0x28] sm:$0xff]  ;;  %v1766_v19 = vpop.eup %1765 }
 0x357   : > { %v1083_v40 = vadd.f32 %v1052_v44, %v907_v11  ;;  %v912_v32 = vmul.f32 %v1762_v54, %v848_v7  ;;  %v897_v11 = vmul.f32 1.442695, %v3094_v41  ;;  %v1768_v35 = vpop.eup %1767 }
 0x358   : > { %1102 = vst.msk [vmem:[#allocation3 + $0x10] sm:$0xff] %vm1099_vm3, %v1085_v9  ;;  %v1770_v22 = vpop.eup %1769  ;;  %v915_v37 = vmul.f32 %v1768_v35, %v851_v42 }
 0x359   : > { %1100 = vst.msk [vmem:[#allocation3] sm:$0xff] %vm1099_vm3, %v1083_v40  ;;  %v856_v40 = vld [vmem:[#allocation3 + $0x68] sm:$0xff]  ;;  %1771 = vpow2.f32 %v897_v11  ;;  %v919_v60 = vmul.f32 %v1770_v22, %v855_v3 }
 0x35a   : > { %v920_v30 = vmul.f32 %v1766_v19, %v856_v40  ;;  %1773 = vpow2.f32 %v905_v52 }
 0x35d   : > { %v1054_v39 = vpop.xlane.xlu2 %1053 }
 0x35e   : > { %v1060_v23 = vpop.xlane.xlu1 %1059  ;;  %v1084_v61 = vadd.f32 %v1054_v39, %v908_v14 }
 0x35f   : > { %v1087_v63 = vadd.f32 %v1060_v23, %v911_v18  ;;  %v903_v18 = vmul.f32 1.442695, %v3096_v10  ;;  %v1772_v23 = vpop.eup %1771 }
 0x360   : > { %1101 = vst.msk [vmem:[#allocation3 + $0x8] sm:$0xff] %vm1099_vm3, %v1084_v61  ;;  %v1774_v62 = vpop.eup %1773 }
 0x361   : > { %1104 = vst.msk [vmem:[#allocation3 + $0x20] sm:$0xff] %vm1099_vm3, %v1087_v63  ;;  %1775 = vpow2.f32 %v903_v18  ;;  %v918_v63 = vmul.f32 %v1772_v23, %v854_v46  ;;  %v922_v38 = vmul.f32 %v1774_v62, %v858_v56 }
 0x365   : > { %v1058_v1 = vpop.xlane.xlu2 %1057 }
 0x366   : > { %v1066_v59 = vpop.xlane.xlu1 %1065  ;;  %v1086_v51 = vadd.f32 %v1058_v1, %v910_v49  ;;  %v1064_v6 = vpop.xlane.xlu0 %1063 }
 0x367   : > { %v1090_v25 = vadd.f32 %v1066_v59, %v914_v16  ;;  %v1089_v50 = vadd.f32 %v1064_v6, %v913_v34  ;;  %v1776_v53 = vpop.eup %1775 }
 0x368   : > { %1103 = vst.msk [vmem:[#allocation3 + $0x18] sm:$0xff] %vm1099_vm3, %v1086_v51  ;;  %v921_v27 = vmul.f32 %v1776_v53, %v857_v2 }
 0x369   : > { %1107 = vst.msk [vmem:[#allocation3 + $0x38] sm:$0xff] %vm1099_vm3, %v1090_v25 }
 0x36a   : > { %1106 = vst.msk [vmem:[#allocation3 + $0x30] sm:$0xff] %vm1099_vm3, %v1089_v50 }
 0x36d   : > { %v1062_v12 = vpop.xlane.xlu2 %1061 }
 0x36e   : > { %v1072_v8 = vpop.xlane.xlu1 %1071  ;;  %v1088_v9 = vadd.f32 %v1062_v12, %v912_v32  ;;  %v1070_v13 = vpop.xlane.xlu0 %1069 }
 0x36f   : > { %v1093_v44 = vadd.f32 %v1072_v8, %v917_v20  ;;  %v1092_v26 = vadd.f32 %v1070_v13, %v916_v33 }
 0x370   : > { %1105 = vst.msk [vmem:[#allocation3 + $0x28] sm:$0xff] %vm1099_vm3, %v1088_v9 }
 0x371   : > { %1110 = vst.msk [vmem:[#allocation3 + $0x50] sm:$0xff] %vm1099_vm3, %v1093_v44 }
 0x372   : > { %1109 = vst.msk [vmem:[#allocation3 + $0x48] sm:$0xff] %vm1099_vm3, %v1092_v26 }
 0x375   : > { %v1068_v55 = vpop.xlane.xlu2 %1067 }
 0x376   : > { %v1078_v14 = vpop.xlane.xlu1 %1077  ;;  %v1091_v57 = vadd.f32 %v1068_v55, %v915_v37  ;;  %v1076_v31 = vpop.xlane.xlu0 %1075 }
 0x377   : > { %v1096_v29 = vadd.f32 %v1078_v14, %v920_v30  ;;  %v1095_v39 = vadd.f32 %v1076_v31, %v919_v60 }
 0x378   : > { %1108 = vst.msk [vmem:[#allocation3 + $0x40] sm:$0xff] %vm1099_vm3, %v1091_v57 }
 0x379   : > { %1113 = vst.msk [vmem:[#allocation3 + $0x68] sm:$0xff] %vm1099_vm3, %v1096_v29 }
 0x37a   : > { %1112 = vst.msk [vmem:[#allocation3 + $0x60] sm:$0xff] %vm1099_vm3, %v1095_v39 }
 0x37e   : > { %v1074_v45 = vpop.xlane.xlu2 %1073  ;;  %v1082_v24 = vpop.xlane.xlu0 %1081 }
 0x37f   : > { %v1094_v61 = vadd.f32 %v1074_v45, %v918_v63  ;;  %v1098_v48 = vadd.f32 %v1082_v24, %v922_v38 }
 0x381   : > { %1111 = vst.msk [vmem:[#allocation3 + $0x58] sm:$0xff] %vm1099_vm3, %v1094_v61 }
 0x382   : > { %1115 = vst.msk [vmem:[#allocation3 + $0x78] sm:$0xff] %vm1099_vm3, %v1098_v48 }
 0x386   : > { %v1080_v16 = vpop.xlane.xlu2 %1079 }
 0x387   : > { %v1097_v49 = vadd.f32 %v1080_v16, %v921_v27 }
 0x389   : > { %1114 = vst.msk [vmem:[#allocation3 + $0x70] sm:$0xff] %vm1099_vm3, %v1097_v49 }
 0x38a PF: > { %s3097_s15 = sld [smem:[#allocation17_spill]] }
 0x390   : > { %p1452_p2 = scmp.ne.s32.totalorder %s3097_s15, 1 }
 0x392   : > { %1135 = sbr.rel (%p1452_p2) target bundleno = 947 (0x3b3), region = 52 }
 0x397   : > { %v1152_v34 = vld [vmem:[#allocation3] sm:$0xff]  ;;  %v1153_v28 = vld [vmem:[#allocation3 + $0x8] sm:$0xff]  ;;  %v1154_v0 = vld [vmem:[#allocation3 + $0x10] sm:$0xff]  ;;  %vm1216_vm4 = vcmask 7168  }
 0x398   : > { %1777 = vlog2.f32 %v1152_v34  ;;  %v1155_v47 = vld [vmem:[#allocation3 + $0x18] sm:$0xff]  ;;  %v1156_v5 = vld [vmem:[#allocation3 + $0x20] sm:$0xff]  ;;  %v1157_v59 = vld [vmem:[#allocation3 + $0x28] sm:$0xff] }
 0x399   : > { %1779 = vlog2.f32 %v1153_v28  ;;  %v1158_v1 = vld [vmem:[#allocation3 + $0x30] sm:$0xff]  ;;  %v1159_v43 = vld [vmem:[#allocation3 + $0x38] sm:$0xff]  ;;  %v1160_v4 = vld [vmem:[#allocation3 + $0x40] sm:$0xff] }
 0x39a   : > { %1781 = vlog2.f32 %v1154_v0  ;;  %v1136_v25 = vld [vmem:[#allocation2] sm:$0xff]  ;;  %v1161_v51 = vld [vmem:[#allocation3 + $0x48] sm:$0xff]  ;;  %v1162_v36 = vld [vmem:[#allocation3 + $0x50] sm:$0xff] }
 0x39b   : > { %1783 = vlog2.f32 %v1155_v47  ;;  %v1137_v50 = vld [vmem:[#allocation2 + $0x8] sm:$0xff]  ;;  %v1138_v58 = vld [vmem:[#allocation2 + $0x10] sm:$0xff]  ;;  %v1163_v20 = vld [vmem:[#allocation3 + $0x58] sm:$0xff] }
 0x39c   : > { %1785 = vlog2.f32 %v1156_v5  ;;  %v1139_v11 = vld [vmem:[#allocation2 + $0x18] sm:$0xff]  ;;  %v1164_v8 = vld [vmem:[#allocation3 + $0x60] sm:$0xff]  ;;  %v1165_v44 = vld [vmem:[#allocation3 + $0x68] sm:$0xff] }
 0x39d   : > { %1787 = vlog2.f32 %v1157_v59  ;;  %v1140_v52 = vld [vmem:[#allocation2 + $0x20] sm:$0xff]  ;;  %v1141_v26 = vld [vmem:[#allocation2 + $0x28] sm:$0xff]  ;;  %v1166_v40 = vld [vmem:[#allocation3 + $0x70] sm:$0xff] }
 0x39e   : > { %v1778_v21 = vpop.eup %1777  ;;  %1789 = vlog2.f32 %v1158_v1  ;;  %v1142_v30 = vld [vmem:[#allocation2 + $0x30] sm:$0xff]  ;;  %v1167_v37 = vld [vmem:[#allocation3 + $0x78] sm:$0xff]  ;;  %v1144_v31 = vld [vmem:[#allocation2 + $0x40] sm:$0xff] }
 0x39f   : > { %v1780_v6 = vpop.eup %1779  ;;  %v1169_v54 = vmul.f32 0.6931472, %v1778_v21  ;;  %1791 = vlog2.f32 %v1159_v43  ;;  %v1143_v14 = vld [vmem:[#allocation2 + $0x38] sm:$0xff]  ;;  %v1145_v62 = vld [vmem:[#allocation2 + $0x48] sm:$0xff]  ;;  %v1146_v45 = vld [vmem:[#allocation2 + $0x50] sm:$0xff] }
 0x3a0   : > { %v1782_v7 = vpop.eup %1781  ;;  %v1171_v17 = vmul.f32 0.6931472, %v1780_v6  ;;  %1793 = vlog2.f32 %v1160_v4  ;;  %v1147_v48 = vld [vmem:[#allocation2 + $0x58] sm:$0xff]  ;;  %v1148_v49 = vld [vmem:[#allocation2 + $0x60] sm:$0xff]  ;;  %v1149_v47 = vld [vmem:[#allocation2 + $0x68] sm:$0xff] }
 0x3a1   : > { %v1784_v32 = vpop.eup %1783  ;;  %v1200_v33 = vadd.f32 %v1169_v54, %v1136_v25  ;;  %v1173_v41 = vmul.f32 0.6931472, %v1782_v7  ;;  %1795 = vlog2.f32 %v1161_v51  ;;  %v1150_v43 = vld [vmem:[#allocation2 + $0x70] sm:$0xff]  ;;  %v1151_v51 = vld [vmem:[#allocation2 + $0x78] sm:$0xff] }
 0x3a2   : > { %v1786_v12 = vpop.eup %1785  ;;  %v1201_v19 = vadd.f32 %v1171_v17, %v1137_v50  ;;  %v1175_v15 = vmul.f32 0.6931472, %v1784_v32  ;;  %1797 = vlog2.f32 %v1162_v36 }
 0x3a3   : > { %v1788_v9 = vpop.eup %1787  ;;  %1217 = vst.msk [vmem:[%s2285_s19] sm:$0xff] %vm1216_vm4, %v1200_v33  ;;  %v1202_v13 = vadd.f32 %v1173_v41, %v1138_v58  ;;  %v1177_v35 = vmul.f32 0.6931472, %v1786_v12  ;;  %1799 = vlog2.f32 %v1163_v20 }
 0x3a4   : > { %v1790_v42 = vpop.eup %1789  ;;  %1218 = vst.msk [vmem:[%s2285_s19 + $0x8] sm:$0xff] %vm1216_vm4, %v1201_v19  ;;  %v1203_v22 = vadd.f32 %v1175_v15, %v1139_v11  ;;  %v1179_v3 = vmul.f32 0.6931472, %v1788_v9  ;;  %1801 = vlog2.f32 %v1164_v8 }
 0x3a5   : > { %v1792_v60 = vpop.eup %1791  ;;  %1219 = vst.msk [vmem:[%s2285_s19 + $0x10] sm:$0xff] %vm1216_vm4, %v1202_v13  ;;  %v1204_v10 = vadd.f32 %v1177_v35, %v1140_v52  ;;  %v1181_v18 = vmul.f32 0.6931472, %v1790_v42  ;;  %1803 = vlog2.f32 %v1165_v44 }
 0x3a6   : > { %v1794_v55 = vpop.eup %1793  ;;  %1220 = vst.msk [vmem:[%s2285_s19 + $0x18] sm:$0xff] %vm1216_vm4, %v1203_v22  ;;  %v1205_v29 = vadd.f32 %v1179_v3, %v1141_v26  ;;  %v1183_v57 = vmul.f32 0.6931472, %v1792_v60  ;;  %1805 = vlog2.f32 %v1166_v40 }
 0x3a7   : > { %v1796_v23 = vpop.eup %1795  ;;  %1221 = vst.msk [vmem:[%s2285_s19 + $0x20] sm:$0xff] %vm1216_vm4, %v1204_v10  ;;  %v1206_v39 = vadd.f32 %v1181_v18, %v1142_v30  ;;  %v1185_v46 = vmul.f32 0.6931472, %v1794_v55  ;;  %1807 = vlog2.f32 %v1167_v37 }
 0x3a8   : > { %v1798_v56 = vpop.eup %1797  ;;  %1222 = vst.msk [vmem:[%s2285_s19 + $0x28] sm:$0xff] %vm1216_vm4, %v1205_v29  ;;  %v1207_v63 = vadd.f32 %v1183_v57, %v1143_v14  ;;  %v1187_v38 = vmul.f32 0.6931472, %v1796_v23 }
 0x3a9   : > { %v1800_v61 = vpop.eup %1799  ;;  %1223 = vst.msk [vmem:[%s2285_s19 + $0x30] sm:$0xff] %vm1216_vm4, %v1206_v39  ;;  %v1208_v24 = vadd.f32 %v1185_v46, %v1144_v31  ;;  %v1189_v53 = vmul.f32 0.6931472, %v1798_v56 }
 0x3aa   : > { %v1802_v2 = vpop.eup %1801  ;;  %1224 = vst.msk [vmem:[%s2285_s19 + $0x38] sm:$0xff] %vm1216_vm4, %v1207_v63  ;;  %v1209_v27 = vadd.f32 %v1187_v38, %v1145_v62  ;;  %v1191_v16 = vmul.f32 0.6931472, %v1800_v61 }
 0x3ab   : > { %v1804_v34 = vpop.eup %1803  ;;  %1225 = vst.msk [vmem:[%s2285_s19 + $0x40] sm:$0xff] %vm1216_vm4, %v1208_v24  ;;  %v1210_v28 = vadd.f32 %v1189_v53, %v1146_v45  ;;  %v1193_v0 = vmul.f32 0.6931472, %v1802_v2 }
 0x3ac   : > { %v1806_v5 = vpop.eup %1805  ;;  %1226 = vst.msk [vmem:[%s2285_s19 + $0x48] sm:$0xff] %vm1216_vm4, %v1209_v27  ;;  %v1211_v59 = vadd.f32 %v1191_v16, %v1147_v48  ;;  %v1195_v1 = vmul.f32 0.6931472, %v1804_v34 }
 0x3ad   : > { %v1808_v4 = vpop.eup %1807  ;;  %1227 = vst.msk [vmem:[%s2285_s19 + $0x50] sm:$0xff] %vm1216_vm4, %v1210_v28  ;;  %v1212_v21 = vadd.f32 %v1193_v0, %v1148_v49  ;;  %v1197_v25 = vmul.f32 0.6931472, %v1806_v5 }
 0x3ae   : > { %1228 = vst.msk [vmem:[%s2285_s19 + $0x58] sm:$0xff] %vm1216_vm4, %v1211_v59  ;;  %v1213_v6 = vadd.f32 %v1195_v1, %v1149_v47  ;;  %v1199_v54 = vmul.f32 0.6931472, %v1808_v4 }
 0x3af   : > { %1229 = vst.msk [vmem:[%s2285_s19 + $0x60] sm:$0xff] %vm1216_vm4, %v1212_v21  ;;  %v1214_v50 = vadd.f32 %v1197_v25, %v1150_v43 }
 0x3b0   : > { %1230 = vst.msk [vmem:[%s2285_s19 + $0x68] sm:$0xff] %vm1216_vm4, %v1213_v6  ;;  %v1215_v36 = vadd.f32 %v1199_v54, %v1151_v51 }
 0x3b1   : > { %1231 = vst.msk [vmem:[%s2285_s19 + $0x70] sm:$0xff] %vm1216_vm4, %v1214_v50 }
 0x3b2   : > { %1232 = vst.msk [vmem:[%s2285_s19 + $0x78] sm:$0xff] %vm1216_vm4, %v1215_v36 }
 0x3b3 PF: > { %s3098_s1 = sld [smem:[#allocation17_spill]]  ;;  %s1453_s16 = sshll.u32 %s2039_s29, 1 }
 0x3b4   : > { %s1259_s9 = sshll.u32 %s313_s3, 4  ;;  %s3100_s23 = sld [smem:[#allocation28_spill]]  ;;  %s1260_s9 = int_to_ptr.vmem [resolvable:$true] %s1259_s9 }
 0x3b5   : > { %s3102_s19 = sld [smem:[#allocation29_spill]]  ;;  %s1239_s2 = scalar_lea.sflag [#allocation7], %s2495_s17 }
 0x3b9   : > { %s1256_s13 = sadd.s32 %s3098_s1, %s1453_s16 }
 0x3ba   : > { %s3101_s8 = smov %s3100_s23  ;;  %s1257_s14 = scalar_lea.hbm %s3100_s23, %s1256_s13 }
 0x3bb   : > { %s1261_s6 = sshll.u32 %s1257_s14, 4  ;;  %s1272_s28 = scalar_lea.hbm %s3102_s19, %s1256_s13  ;;  %s1262_s6 = int_to_ptr.hbm [resolvable:$true] %s1261_s6 }
 0x3bc   : > { %s1883_s30 = sshra.s32 %s1262_s6, 4  ;;  %s1889_s1 = scalar_lea.hbm %s3101_s8, 4  ;;  %s1884_s30 = int_to_ptr.hbm [resolvable:$true] %s1883_s30 }
 0x3bd   : > { %s1885_s5 = scalar_lea.hbm %s1884_s30, 1  ;;  %p1890_p12 = scmp.lt.s32.totalorder %s1884_s30, %s3101_s8 }
 0x3be   : > { %p1886_p8 = scmp.ne.s32.totalorder %s1884_s30, %s1885_s5  ;;  %p1891_p3 = scmp.lt.s32.totalorder %s1889_s1, %s1885_s5 }
 0x3c0   : > { %p1887_p9 = pnand %p1886_p8, %p2235_p1  ;;  %p1892_p13 = por %p1891_p3, %p1890_p12 }
 0x3c2   : > { %p1888_p10 = pneg %p1887_p9 }
 0x3c4   : > { %p1893_p0 = pnand %p1892_p13, %p1888_p10 }
 0x3c6   : > { %1896 = shalt.err (!%p1893_p0)
}
 0x3c7   : > { %1511 = dma.vmem_to_hbm [thread:$0]  (%p2235_p1), %s1260_s9, 16, %s1262_s6, %s1239_s2  }
 0x3c8   : > { %s3103_s13 = scalar_lea.vmem [#allocation11], %s2495_s17  ;;  %s1276_s23 = sshll.u32 %s1272_s28, 4  ;;  %s1277_s23 = int_to_ptr.hbm [resolvable:$true] %s1276_s23 }
 0x3c9   : > { %s1274_s0 = sshll.u32 %s3103_s13, 4  ;;  %s1243_s14 = scalar_lea.sflag [#allocation12], %s2495_s17  ;;  %s1275_s0 = int_to_ptr.vmem [resolvable:$true] %s1274_s0 }
 0x3ca   : > { %s1911_s10 = sshra.s32 %s1277_s23, 4  ;;  %s1917_s29 = scalar_lea.hbm %s3102_s19, 4  ;;  %s1912_s10 = int_to_ptr.hbm [resolvable:$true] %s1911_s10 }
 0x3cb   : > { %s1913_s15 = scalar_lea.hbm %s1912_s10, 1  ;;  %p1918_p11 = scmp.lt.s32.totalorder %s1912_s10, %s3102_s19 }
 0x3cc   : > { %p1914_p4 = scmp.ne.s32.totalorder %s1912_s10, %s1913_s15  ;;  %p1919_p2 = scmp.lt.s32.totalorder %s1917_s29, %s1913_s15 }
 0x3ce   : > { %p1915_p7 = pnand %p1914_p4, %p2235_p1  ;;  %p1920_p8 = por %p1919_p2, %p1918_p11 }
 0x3d0   : > { %p1916_p6 = pneg %p1915_p7 }
 0x3d2   : > { %p1921_p9 = pnand %p1920_p8, %p1916_p6 }
 0x3d4   : > { %1924 = shalt.err (!%p1921_p9)
}
 0x3d5   : > { %1512 = dma.vmem_to_hbm [thread:$0]  (%p2235_p1), %s1275_s0, 16, %s1277_s23, %s1243_s14  }
 0x3d6 PF: > { %p1530_p10 = scmp.ge.s32.totalorder %s2051_s7, 2  ;;  %s1296_s2 = sand.u32 1, %s1999_s20  }
 0x3d7   : > { %s1297_s17 = scalar_lea.sflag [#allocation7], %s1296_s2 }
 0x3d8   : > { %p1523_p12 = pnand %p1530_p10, %p2250_p5 }
 0x3da   : > { %p1524_p3 = pneg %p1523_p12 }
 0x3dc   : > { %1990 = dma.done.wait (%p1524_p3), %s1297_s17, 16  }
 0x3dd   : > { %1992 = vsyncadd (%p1524_p3), %s1297_s17, 4294967280  ;;  %s1306_s28 = scalar_lea.sflag [#allocation12], %s1296_s2 }
 0x3de   : > { %1994 = dma.done.wait (%p1524_p3), %s1306_s28, 16  }
 0x3df   : > { %1996 = vsyncadd (%p1524_p3), %s1306_s28, 4294967280  ;;  %s29_s7 = sadd.s32 1, %s2051_s7   ;;  %s3105_s12 = sld [smem:[#allocation22_spill]] }
 0x3e0   : > { %p2981_p13 = scmp.ge.s32.totalorder %s29_s7, 6   ;;  %s3106_s9 = sld [smem:[#allocation24_spill]] }
 0x3e1   : > { %s3107_s28 = sld [smem:[#allocation18_spill]]  ;;  %s3111_s20 = smov %s2003_s21 }
 0x3e2   : > { %s3108_s29 = sld [smem:[#allocation19_spill]]  ;;  %s3112_s21 = smov %s2007_s22 }
 0x3e3   : > { %s3109_s30 = sld [smem:[#allocation20_spill]]  ;;  %s3113_s22 = smov %s2247_s4 }
 0x3e4   : > { %s3110_s6 = sld [smem:[#allocation21_spill]]  ;;  %s3114_s23 = smov %s2015_s24 }
 0x3e5   : > { %s3115_s24 = smov %s2019_s25  ;;  %s3116_s25 = smov %s3105_s12 }
 0x3e6   : > { %s3117_s0 = smov %s2027_s26  ;;  %s3118_s26 = smov %s2031_s27 }
 0x3e7   : > { %s3119_s27 = smov %s3106_s9  ;;  %28 = sbr.rel (!%p2981_p13) target bundleno = 21 (0x15), region = 131 }
 0x3ec   :  { %1311 = vsyncpa [#allocation6], 1 }
 0x3ed   :  { %1313 = vsyncpa [#allocation6 + $0x1], 1 }
 0x3ee   :  { %1314 = vsyncpa [#allocation9], 1 }
 0x3ef   :  { %1316 = vsyncpa [#allocation9 + $0x1], 1 }
 0x3f0   :  { %1317 = vsyncpa [#allocation7], 1 }
 0x3f1   :  { %1319 = vsyncpa [#allocation7 + $0x1], 1 }
 0x3f2   :  { %1320 = vsyncpa [#allocation12], 1 }
 0x3f3   :  { %1322 = vsyncpa [#allocation12 + $0x1], 1 }

</bundles_post_ra>
